<compile_context>
chip_gen: v6e
topology: v6e:2x2x1
jax: 0.10.0
libtpu: 0.0.40
codegen_flags: <defaults>
</compile_context>

<pallas_src>
import jax
import jax.numpy as jnp
from jax import lax
from jax.experimental import pallas as pl
from jax.experimental.pallas import tpu as pltpu

# ----------------------------- config ---------------------------------------
B = 2              # batch
S = 8              # question length (seq)
N = 8              # num_objs
VOCAB = 50         # config.w_emb_size
W_EMB = 300        # word embedding dim (fixed to 300 in the module)
Q_DIM = 32         # config.q_emb_dim (GRU hidden)
V_DIM = 32         # config.v_dim
B_DIM = 4          # config.b_dim (bounding boxes; unused by forward)
INTERACTOR = (64, 64)     # config.interactor_sizes
AGGREGATOR = (64, 32)     # config.aggregator_sizes
NUM_ANS = 10       # config.num_ans_candidates
PAD_ANS = 128      # lane-dense padded classifier width (sliced back to NUM_ANS)

D = V_DIM + Q_DIM  # per-object feature after concat with the question embedding
H1, H2 = INTERACTOR
G1, G2 = AGGREGATOR


# ------------------------- fused forward kernel -----------------------------
def _fused_kernel(ids_ref, v_ref,                          # [S*B,1] i32, [B*N,V_DIM]
                  ewr_ref, ewz_ref, ewn_ref,               # emb@W_i{r,z,n}  [VOCAB,Q]
                  whr_ref, whz_ref, whn_ref,               # W_h{r,z,n}      [Q,Q]
                  bir_ref, biz_ref, bin_ref,               # input biases    [1,Q]
                  bhr_ref, bhz_ref, bhn_ref,               # hidden biases   [1,Q]
                  w1av_ref, w1aq_ref, w1bv_ref, w1bq_ref,  # split W1 (concats folded)
                  b1_ref,                                  # [1,H1]
                  w2_ref, b2_ref,                          # interactor layer 2
                  wa1_ref, ba1_ref, wa2_ref, ba2_ref,      # aggregator MLP
                  wcp_ref, bcp_ref,                        # classifier (padded lanes)
                  pmask_ref,                               # [B, B*N*N] 0/1 pool mask
                  out_ref):                                # [B, PAD_ANS]
    f32 = jnp.float32
    bf16 = jnp.bfloat16

    # ---- 1. embedding lookup folded into the per-gate GRU input projection --
    # Out-of-range token ids silently map to a zero embedding row (same caveat
    # as the original one-hot gather).
    onehot = (ids_ref[...] ==
              lax.broadcasted_iota(jnp.int32, (S * B, VOCAB), 1)).astype(f32)
    xr_all = jnp.dot(onehot, ewr_ref[...], preferred_element_type=f32) + bir_ref[...]
    xz_all = jnp.dot(onehot, ewz_ref[...], preferred_element_type=f32) + biz_ref[...]
    xn_all = jnp.dot(onehot, ewn_ref[...], preferred_element_type=f32) + bin_ref[...]

    # ---- 2. GRU question encoder (statically unrolled, per-gate weights) ----
    # Per-gate weights avoid lane-offset slices of a packed [*,3Q] output; all
    # recurrence math stays f32 (trivial matmuls, avoids bf16 error growth).
    whr, whz, whn = whr_ref[...], whz_ref[...], whn_ref[...]
    bhr, bhz, bhn = bhr_ref[...], bhz_ref[...], bhn_ref[...]
    h = jnp.zeros((B, Q_DIM), dtype=f32)
    for s in range(S):
        hr = jnp.dot(h, whr, preferred_element_type=f32) + bhr
        hz = jnp.dot(h, whz, preferred_element_type=f32) + bhz
        hn = jnp.dot(h, whn, preferred_element_type=f32) + bhn
        lo, hi = s * B, (s + 1) * B
        r = jax.nn.sigmoid(xr_all[lo:hi] + hr)
        z = jax.nn.sigmoid(xz_all[lo:hi] + hz)
        n = jnp.tanh(xn_all[lo:hi] + r * hn)   # PyTorch GRU: b_hn stays inside r*(...)
        h = (1.0 - z) * n + z * h
    q_emb = h.astype(bf16)                                              # [B, Q]

    # ---- 3. pairwise relation module: all B*N*N pairs in one matmul ---------
    # concat(vq_i, vq_j) @ W1 == vq_i @ W1a + vq_j @ W1b, and
    # vq @ W1a == v @ W1a[:V] + q_emb @ W1a[V:]  (vq / pairs never materialized;
    # W1 split into four weights so no lane-offset slices are needed).
    vb = v_ref[...].astype(bf16)                                        # [B*N, V_DIM]
    a3 = (jnp.dot(vb, w1av_ref[...], preferred_element_type=f32).reshape(B, N, H1)
          + jnp.dot(q_emb, w1aq_ref[...], preferred_element_type=f32)[:, None, :])
    c3 = (jnp.dot(vb, w1bv_ref[...], preferred_element_type=f32).reshape(B, N, H1)
          + jnp.dot(q_emb, w1bq_ref[...], preferred_element_type=f32)[:, None, :])
    h1 = jax.nn.relu(a3[:, :, None, :] + c3[:, None, :, :] + b1_ref[...])
    h1 = h1.reshape(B * N * N, H1)                                      # [128, H1]
    h2 = jax.nn.relu(jnp.dot(h1.astype(bf16), w2_ref[...],
                             preferred_element_type=f32) + b2_ref[...]) # [128, H2]
    # per-batch pooling as a 0/1 block-mask MXU matmul (no reshape + XLU sum)
    pooled = jnp.dot(pmask_ref[...], h2, preferred_element_type=f32)    # [B, H2]

    # ---- 4. aggregator MLP + classifier (lane-dense padded output) ----------
    g = jax.nn.relu(jnp.dot(pooled.astype(bf16), wa1_ref[...],
                            preferred_element_type=f32) + ba1_ref[...])
    g = jax.nn.relu(jnp.dot(g.astype(bf16), wa2_ref[...],
                            preferred_element_type=f32) + ba2_ref[...])
    out_ref[...] = (jnp.dot(g.astype(bf16), wcp_ref[...],
                            preferred_element_type=f32) + bcp_ref[...]) # [B, PAD_ANS]


# ----------------------------- packing (one-time, at init) -------------------
def pack_params(params):
    """Host-side packing, done ONCE at init (not in the per-call path):
    fold emb@W_i per GRU gate, fold the pair/feature concats into four split
    W1 weights, pad the classifier to lane-dense width, build the 0/1 pooling
    mask, and store the relation/aggregator/classifier weights in bf16."""
    bf16 = jnp.bfloat16
    gp, rp = params["gru"], params["rel"]
    emb = params["emb"]

    # embedding folded into GRU input projections: [VOCAB,300]@[300,Q] -> [VOCAB,Q]
    ewr = emb @ gp["wir"]
    ewz = emb @ gp["wiz"]
    ewn = emb @ gp["win"]

    # split W1: pairs@W1 = vq_i@W1a + vq_j@W1b; vq@W1a = v@W1a[:V] + q@W1a[V:]
    w1 = rp["w1"]                                                       # [2D, H1]
    w1a, w1b = w1[:D], w1[D:]
    w1av = w1a[:V_DIM].astype(bf16)                                     # [V_DIM, H1]
    w1aq = w1a[V_DIM:].astype(bf16)                                     # [Q_DIM, H1]
    w1bv = w1b[:V_DIM].astype(bf16)
    w1bq = w1b[V_DIM:].astype(bf16)

    # classifier padded to lane-dense 128 output lanes
    wcp = jnp.pad(rp["wc"], ((0, 0), (0, PAD_ANS - NUM_ANS))).astype(bf16)
    bcp = jnp.pad(rp["bc"], ((0, 0), (0, PAD_ANS - NUM_ANS)))

    # 0/1 block mask so per-batch pooling runs on the MXU (kept f32 -> exact)
    pmask = jnp.repeat(jnp.eye(B, dtype=jnp.float32), N * N, axis=1)    # [B, B*N*N]

    return (ewr, ewz, ewn,
            gp["whr"], gp["whz"], gp["whn"],
            gp["bir"], gp["biz"], gp["bin"],
            gp["bhr"], gp["bhz"], gp["bhn"],
            w1av, w1aq, w1bv, w1bq, rp["b1"],
            rp["w2"].astype(bf16), rp["b2"],
            rp["wa1"].astype(bf16), rp["ba1"],
            rp["wa2"].astype(bf16), rp["ba2"],
            wcp, bcp, pmask)


# ----------------------------- wrapper ---------------------------------------
def _full_spec(shape):
    nd = len(shape)
    return pl.BlockSpec(shape, lambda i, _nd=nd: (0,) * _nd)


@jax.jit
def _forward_jit(v, q, packed):
    # Per-call prep is only metadata-level: transpose/reshape of tiny inputs.
    ids = jnp.transpose(q.astype(jnp.int32)).reshape(S * B, 1)   # time-major [S*B, 1]
    v2 = v.reshape(B * N, V_DIM)
    inputs = (ids, v2) + tuple(packed)
    # TODO(synk): if batch ever grows beyond this toy B=2, add a leading
    # "parallel" batch grid axis so v7x's second TensorCore gets work.
    out = pl.pallas_call(
        _fused_kernel,
        grid=(1,),
        in_specs=[_full_spec(x.shape) for x in inputs],
        out_specs=pl.BlockSpec((B, PAD_ANS), lambda i: (0, 0)),
        out_shape=jax.ShapeDtypeStruct((B, PAD_ANS), jnp.float32),
        compiler_params=pltpu.CompilerParams(dimension_semantics=("arbitrary",)),
    )(*inputs)
    return out[:, :NUM_ANS]


def relation_network_forward(v, b, q, packed_params, a=None, qlen=None):
    del b, a, qlen   # boxes / answers / qlen are unused by the PyTorch forward
    return _forward_jit(v, q, packed_params)


# ----------------------------- parameters -----------------------------------
def init_params(key):
    keys = iter(jax.random.split(key, 40))

    def w(shape, scale):
        return (scale * jax.random.normal(next(keys), shape)).astype(jnp.float32)

    p = {}
    # TODO(synk): GloVe-initialized embedding replaced by deterministic random init.
    p["emb"] = w((VOCAB, W_EMB), 0.3)

    gp = {}
    for n in ("wir", "wiz", "win"):
        gp[n] = w((W_EMB, Q_DIM), 0.05)
    for n in ("whr", "whz", "whn"):
        gp[n] = w((Q_DIM, Q_DIM), 0.1)
    for n in ("bir", "biz", "bin", "bhr", "bhz", "bhn"):
        gp[n] = w((1, Q_DIM), 0.1)
    p["gru"] = gp

    rp = {
        "w1": w((2 * D, H1), 0.1), "b1": w((1, H1), 0.1),
        "w2": w((H1, H2), 0.1),    "b2": w((1, H2), 0.1),
        "wa1": w((H2, G1), 0.1),   "ba1": w((1, G1), 0.1),
        "wa2": w((G1, G2), 0.1),   "ba2": w((1, G2), 0.1),
        "wc": w((G2, NUM_ANS), 0.1), "bc": w((1, NUM_ANS), 0.1),
    }
    p["rel"] = rp
    return p


# ----------------------------- pure-JAX reference (f32) ----------------------
def reference_forward(v, q, params):
    qe = jnp.take(params["emb"], q, axis=0)
    gp = params["gru"]

    def step(h, x_t):
        r = jax.nn.sigmoid(x_t @ gp["wir"] + gp["bir"] + h @ gp["whr"] + gp["bhr"])
        z = jax.nn.sigmoid(x_t @ gp["wiz"] + gp["biz"] + h @ gp["whz"] + gp["bhz"])
        n = jnp.tanh(x_t @ gp["win"] + gp["bin"] + r * (h @ gp["whn"] + gp["bhn"]))
        return (1.0 - z) * n + z * h, None

    h0 = jnp.zeros((v.shape[0], Q_DIM), jnp.float32)
    h_last, _ = lax.scan(step, h0, jnp.transpose(qe, (1, 0, 2)))

    vq = jnp.concatenate(
        [v, jnp.broadcast_to(h_last[:, None, :], (v.shape[0], v.shape[1], Q_DIM))],
        axis=2)
    rp = params["rel"]
    Bb, Nn, Dd = vq.shape
    left = jnp.broadcast_to(vq[:, :, None, :], (Bb, Nn, Nn, Dd))
    right = jnp.broadcast_to(vq[:, None, :, :], (Bb, Nn, Nn, Dd))
    pairs = jnp.concatenate([left, right], axis=-1)          # [B, N, N, 2D]
    h1 = jax.nn.relu(pairs @ rp["w1"] + rp["b1"])
    h2 = jax.nn.relu(h1 @ rp["w2"] + rp["b2"])
    pooled = jnp.sum(h2, axis=(1, 2))
    g = jax.nn.relu(pooled @ rp["wa1"] + rp["ba1"])
    g = jax.nn.relu(g @ rp["wa2"] + rp["ba2"])
    return g @ rp["wc"] + rp["bc"]


# ----------------------------- main ------------------------------------------
if __name__ == "__main__":
    key = jax.random.PRNGKey(0)
    kp, kv, kb, kq = jax.random.split(key, 4)
    params = init_params(kp)
    packed = pack_params(params)          # one-time packing, outside per-call path

    v = jax.random.normal(kv, (B, N, V_DIM), dtype=jnp.float32)
    boxes = jax.random.normal(kb, (B, N, B_DIM), dtype=jnp.float32)
    q = jax.random.randint(kq, (B, S), 0, VOCAB, dtype=jnp.int32)

    logits = relation_network_forward(v, boxes, q, packed)
    logits = jax.block_until_ready(logits)

    ref = jax.block_until_ready(reference_forward(v, q, params))

    assert logits.shape == (B, NUM_ANS), logits.shape
    assert bool(jnp.all(jnp.isfinite(logits)))
    # Tolerance accommodates bf16 relation/aggregator/classifier weights (MXU
    # inputs) vs. the pure-f32 reference; genuine packing/algebra bugs produce
    # O(1)+ errors and are still caught.
    if not jnp.allclose(logits, ref, atol=2e-1, rtol=5e-2):
        raise AssertionError(
            f"kernel/reference mismatch, max abs diff = "
            f"{float(jnp.max(jnp.abs(logits - ref)))}")
    print("KERNEL_OK")
</pallas_src>

<mosaic_0001>
module attributes {stable_mosaic.version = 11 : i64} {
  func.func @_fused_kernel(%arg0: i32, %arg1: memref<16x1xi32, #tpu.memory_space<vmem>>, %arg2: memref<16x32xf32, #tpu.memory_space<vmem>>, %arg3: memref<50x32xf32, #tpu.memory_space<vmem>>, %arg4: memref<50x32xf32, #tpu.memory_space<vmem>>, %arg5: memref<50x32xf32, #tpu.memory_space<vmem>>, %arg6: memref<32x32xf32, #tpu.memory_space<vmem>>, %arg7: memref<32x32xf32, #tpu.memory_space<vmem>>, %arg8: memref<32x32xf32, #tpu.memory_space<vmem>>, %arg9: memref<1x32xf32, #tpu.memory_space<vmem>>, %arg10: memref<1x32xf32, #tpu.memory_space<vmem>>, %arg11: memref<1x32xf32, #tpu.memory_space<vmem>>, %arg12: memref<1x32xf32, #tpu.memory_space<vmem>>, %arg13: memref<1x32xf32, #tpu.memory_space<vmem>>, %arg14: memref<1x32xf32, #tpu.memory_space<vmem>>, %arg15: memref<32x64xbf16, #tpu.memory_space<vmem>>, %arg16: memref<32x64xbf16, #tpu.memory_space<vmem>>, %arg17: memref<32x64xbf16, #tpu.memory_space<vmem>>, %arg18: memref<32x64xbf16, #tpu.memory_space<vmem>>, %arg19: memref<1x64xf32, #tpu.memory_space<vmem>>, %arg20: memref<64x64xbf16, #tpu.memory_space<vmem>>, %arg21: memref<1x64xf32, #tpu.memory_space<vmem>>, %arg22: memref<64x64xbf16, #tpu.memory_space<vmem>>, %arg23: memref<1x64xf32, #tpu.memory_space<vmem>>, %arg24: memref<64x32xbf16, #tpu.memory_space<vmem>>, %arg25: memref<1x32xf32, #tpu.memory_space<vmem>>, %arg26: memref<32x128xbf16, #tpu.memory_space<vmem>>, %arg27: memref<1x128xf32, #tpu.memory_space<vmem>>, %arg28: memref<2x128xf32, #tpu.memory_space<vmem>>, %arg29: memref<2x128xf32, #tpu.memory_space<vmem>>) attributes {dimension_semantics = [#tpu.dimension_semantics<arbitrary>], iteration_bounds = array<i64: 1>, scalar_prefetch = 0 : i64, scratch_operands = 0 : i64, tpu.core_type = #tpu.core_type<tc>, window_params = [{pipeline_mode = #tpu.pipeline_mode<synchronous>, transform_indices = @transform_0, window_bounds = array<i64: 16, 1>}, {pipeline_mode = #tpu.pipeline_mode<synchronous>, transform_indices = @transform_1, window_bounds = array<i64: 16, 32>}, {pipeline_mode = #tpu.pipeline_mode<synchronous>, transform_indices = @transform_2, window_bounds = array<i64: 50, 32>}, {pipeline_mode = #tpu.pipeline_mode<synchronous>, transform_indices = @transform_3, window_bounds = array<i64: 50, 32>}, {pipeline_mode = #tpu.pipeline_mode<synchronous>, transform_indices = @transform_4, window_bounds = array<i64: 50, 32>}, {pipeline_mode = #tpu.pipeline_mode<synchronous>, transform_indices = @transform_5, window_bounds = array<i64: 32, 32>}, {pipeline_mode = #tpu.pipeline_mode<synchronous>, transform_indices = @transform_6, window_bounds = array<i64: 32, 32>}, {pipeline_mode = #tpu.pipeline_mode<synchronous>, transform_indices = @transform_7, window_bounds = array<i64: 32, 32>}, {pipeline_mode = #tpu.pipeline_mode<synchronous>, transform_indices = @transform_8, window_bounds = array<i64: 1, 32>}, {pipeline_mode = #tpu.pipeline_mode<synchronous>, transform_indices = @transform_9, window_bounds = array<i64: 1, 32>}, {pipeline_mode = #tpu.pipeline_mode<synchronous>, transform_indices = @transform_10, window_bounds = array<i64: 1, 32>}, {pipeline_mode = #tpu.pipeline_mode<synchronous>, transform_indices = @transform_11, window_bounds = array<i64: 1, 32>}, {pipeline_mode = #tpu.pipeline_mode<synchronous>, transform_indices = @transform_12, window_bounds = array<i64: 1, 32>}, {pipeline_mode = #tpu.pipeline_mode<synchronous>, transform_indices = @transform_13, window_bounds = array<i64: 1, 32>}, {pipeline_mode = #tpu.pipeline_mode<synchronous>, transform_indices = @transform_14, window_bounds = array<i64: 32, 64>}, {pipeline_mode = #tpu.pipeline_mode<synchronous>, transform_indices = @transform_15, window_bounds = array<i64: 32, 64>}, {pipeline_mode = #tpu.pipeline_mode<synchronous>, transform_indices = @transform_16, window_bounds = array<i64: 32, 64>}, {pipeline_mode = #tpu.pipeline_mode<synchronous>, transform_indices = @transform_17, window_bounds = array<i64: 32, 64>}, {pipeline_mode = #tpu.pipeline_mode<synchronous>, transform_indices = @transform_18, window_bounds = array<i64: 1, 64>}, {pipeline_mode = #tpu.pipeline_mode<synchronous>, transform_indices = @transform_19, window_bounds = array<i64: 64, 64>}, {pipeline_mode = #tpu.pipeline_mode<synchronous>, transform_indices = @transform_20, window_bounds = array<i64: 1, 64>}, {pipeline_mode = #tpu.pipeline_mode<synchronous>, transform_indices = @transform_21, window_bounds = array<i64: 64, 64>}, {pipeline_mode = #tpu.pipeline_mode<synchronous>, transform_indices = @transform_22, window_bounds = array<i64: 1, 64>}, {pipeline_mode = #tpu.pipeline_mode<synchronous>, transform_indices = @transform_23, window_bounds = array<i64: 64, 32>}, {pipeline_mode = #tpu.pipeline_mode<synchronous>, transform_indices = @transform_24, window_bounds = array<i64: 1, 32>}, {pipeline_mode = #tpu.pipeline_mode<synchronous>, transform_indices = @transform_25, window_bounds = array<i64: 32, 128>}, {pipeline_mode = #tpu.pipeline_mode<synchronous>, transform_indices = @transform_26, window_bounds = array<i64: 1, 128>}, {pipeline_mode = #tpu.pipeline_mode<synchronous>, transform_indices = @transform_27, window_bounds = array<i64: 2, 128>}, {pipeline_mode = #tpu.pipeline_mode<synchronous>, transform_indices = @transform_28, window_bounds = array<i64: 2, 128>}]} {
    %c0 = arith.constant 0 : index
    %c0_0 = arith.constant 0 : index
    %0 = vector.load %arg1[%c0, %c0_0] : memref<16x1xi32, #tpu.memory_space<vmem>>, vector<16x1xi32>
    %1 = tpu.iota {dimensions = array<i32: 1>} : vector<16x50xi32>
    %2 = vector.broadcast %0 : vector<16x1xi32> to vector<16x50xi32>
    %3 = arith.cmpi eq, %2, %1 : vector<16x50xi32>
    %4 = arith.extui %3 : vector<16x50xi1> to vector<16x50xi32>
    %5 = arith.sitofp %4 : vector<16x50xi32> to vector<16x50xf32>
    %c0_1 = arith.constant 0 : index
    %c0_2 = arith.constant 0 : index
    %6 = vector.load %arg3[%c0_1, %c0_2] : memref<50x32xf32, #tpu.memory_space<vmem>>, vector<50x32xf32>
    %cst = arith.constant dense<0.000000e+00> : vector<16x32xf32>
    %7 = tpu.matmul %5, %6, %cst {dimension_numbers = #tpu.dot_dimension_numbers<[1], [0], [0], [1], [0, 0, 1, 1], [], []>} : vector<16x50xf32>, vector<50x32xf32>, vector<16x32xf32> -> vector<16x32xf32>
    %c0_3 = arith.constant 0 : index
    %c0_4 = arith.constant 0 : index
    %8 = vector.load %arg9[%c0_3, %c0_4] : memref<1x32xf32, #tpu.memory_space<vmem>>, vector<1x32xf32>
    %9 = vector.broadcast %8 : vector<1x32xf32> to vector<16x32xf32>
    %10 = arith.addf %7, %9 : vector<16x32xf32>
    %c0_5 = arith.constant 0 : index
    %c0_6 = arith.constant 0 : index
    %11 = vector.load %arg4[%c0_5, %c0_6] : memref<50x32xf32, #tpu.memory_space<vmem>>, vector<50x32xf32>
    %cst_7 = arith.constant dense<0.000000e+00> : vector<16x32xf32>
    %12 = tpu.matmul %5, %11, %cst_7 {dimension_numbers = #tpu.dot_dimension_numbers<[1], [0], [0], [1], [0, 0, 1, 1], [], []>} : vector<16x50xf32>, vector<50x32xf32>, vector<16x32xf32> -> vector<16x32xf32>
    %c0_8 = arith.constant 0 : index
    %c0_9 = arith.constant 0 : index
    %13 = vector.load %arg10[%c0_8, %c0_9] : memref<1x32xf32, #tpu.memory_space<vmem>>, vector<1x32xf32>
    %14 = vector.broadcast %13 : vector<1x32xf32> to vector<16x32xf32>
    %15 = arith.addf %12, %14 : vector<16x32xf32>
    %c0_10 = arith.constant 0 : index
    %c0_11 = arith.constant 0 : index
    %16 = vector.load %arg5[%c0_10, %c0_11] : memref<50x32xf32, #tpu.memory_space<vmem>>, vector<50x32xf32>
    %cst_12 = arith.constant dense<0.000000e+00> : vector<16x32xf32>
    %17 = tpu.matmul %5, %16, %cst_12 {dimension_numbers = #tpu.dot_dimension_numbers<[1], [0], [0], [1], [0, 0, 1, 1], [], []>} : vector<16x50xf32>, vector<50x32xf32>, vector<16x32xf32> -> vector<16x32xf32>
    %c0_13 = arith.constant 0 : index
    %c0_14 = arith.constant 0 : index
    %18 = vector.load %arg11[%c0_13, %c0_14] : memref<1x32xf32, #tpu.memory_space<vmem>>, vector<1x32xf32>
    %19 = vector.broadcast %18 : vector<1x32xf32> to vector<16x32xf32>
    %20 = arith.addf %17, %19 : vector<16x32xf32>
    %c0_15 = arith.constant 0 : index
    %c0_16 = arith.constant 0 : index
    %21 = vector.load %arg6[%c0_15, %c0_16] : memref<32x32xf32, #tpu.memory_space<vmem>>, vector<32x32xf32>
    %c0_17 = arith.constant 0 : index
    %c0_18 = arith.constant 0 : index
    %22 = vector.load %arg7[%c0_17, %c0_18] : memref<32x32xf32, #tpu.memory_space<vmem>>, vector<32x32xf32>
    %c0_19 = arith.constant 0 : index
    %c0_20 = arith.constant 0 : index
    %23 = vector.load %arg8[%c0_19, %c0_20] : memref<32x32xf32, #tpu.memory_space<vmem>>, vector<32x32xf32>
    %c0_21 = arith.constant 0 : index
    %c0_22 = arith.constant 0 : index
    %24 = vector.load %arg12[%c0_21, %c0_22] : memref<1x32xf32, #tpu.memory_space<vmem>>, vector<1x32xf32>
    %c0_23 = arith.constant 0 : index
    %c0_24 = arith.constant 0 : index
    %25 = vector.load %arg13[%c0_23, %c0_24] : memref<1x32xf32, #tpu.memory_space<vmem>>, vector<1x32xf32>
    %c0_25 = arith.constant 0 : index
    %c0_26 = arith.constant 0 : index
    %26 = vector.load %arg14[%c0_25, %c0_26] : memref<1x32xf32, #tpu.memory_space<vmem>>, vector<1x32xf32>
    %cst_27 = arith.constant 0.000000e+00 : f32
    %27 = vector.broadcast %cst_27 : f32 to vector<2x32xf32>
    %cst_28 = arith.constant dense<0.000000e+00> : vector<2x32xf32>
    %28 = tpu.matmul %27, %21, %cst_28 {dimension_numbers = #tpu.dot_dimension_numbers<[1], [0], [0], [1], [0, 0, 1, 1], [], []>} : vector<2x32xf32>, vector<32x32xf32>, vector<2x32xf32> -> vector<2x32xf32>
    %29 = vector.broadcast %24 : vector<1x32xf32> to vector<2x32xf32>
    %30 = arith.addf %28, %29 : vector<2x32xf32>
    %cst_29 = arith.constant dense<0.000000e+00> : vector<2x32xf32>
    %31 = tpu.matmul %27, %22, %cst_29 {dimension_numbers = #tpu.dot_dimension_numbers<[1], [0], [0], [1], [0, 0, 1, 1], [], []>} : vector<2x32xf32>, vector<32x32xf32>, vector<2x32xf32> -> vector<2x32xf32>
    %32 = vector.broadcast %25 : vector<1x32xf32> to vector<2x32xf32>
    %33 = arith.addf %31, %32 : vector<2x32xf32>
    %cst_30 = arith.constant dense<0.000000e+00> : vector<2x32xf32>
    %34 = tpu.matmul %27, %23, %cst_30 {dimension_numbers = #tpu.dot_dimension_numbers<[1], [0], [0], [1], [0, 0, 1, 1], [], []>} : vector<2x32xf32>, vector<32x32xf32>, vector<2x32xf32> -> vector<2x32xf32>
    %35 = vector.broadcast %26 : vector<1x32xf32> to vector<2x32xf32>
    %36 = arith.addf %34, %35 : vector<2x32xf32>
    %37 = vector.extract_strided_slice %10 {offsets = [0, 0], sizes = [2, 32], strides = [1, 1]} : vector<16x32xf32> to vector<2x32xf32>
    %38 = arith.addf %37, %30 : vector<2x32xf32>
    %39 = arith.negf %38 : vector<2x32xf32>
    %40 = math.exp %39 : vector<2x32xf32>
    %cst_31 = arith.constant 1.000000e+00 : f32
    %41 = vector.broadcast %cst_31 : f32 to vector<2x32xf32>
    %42 = arith.addf %41, %40 : vector<2x32xf32>
    %43 = arith.divf %41, %42 : vector<2x32xf32>
    %44 = vector.extract_strided_slice %15 {offsets = [0, 0], sizes = [2, 32], strides = [1, 1]} : vector<16x32xf32> to vector<2x32xf32>
    %45 = arith.addf %44, %33 : vector<2x32xf32>
    %46 = arith.negf %45 : vector<2x32xf32>
    %47 = math.exp %46 : vector<2x32xf32>
    %cst_32 = arith.constant 1.000000e+00 : f32
    %48 = vector.broadcast %cst_32 : f32 to vector<2x32xf32>
    %49 = arith.addf %48, %47 : vector<2x32xf32>
    %50 = arith.divf %48, %49 : vector<2x32xf32>
    %51 = vector.extract_strided_slice %20 {offsets = [0, 0], sizes = [2, 32], strides = [1, 1]} : vector<16x32xf32> to vector<2x32xf32>
    %52 = arith.mulf %43, %36 : vector<2x32xf32>
    %53 = arith.addf %51, %52 : vector<2x32xf32>
    %54 = math.tanh %53 : vector<2x32xf32>
    %cst_33 = arith.constant 1.000000e+00 : f32
    %55 = vector.broadcast %cst_33 : f32 to vector<2x32xf32>
    %56 = arith.subf %55, %50 : vector<2x32xf32>
    %57 = arith.mulf %56, %54 : vector<2x32xf32>
    %58 = arith.mulf %50, %27 : vector<2x32xf32>
    %59 = arith.addf %57, %58 : vector<2x32xf32>
    %cst_34 = arith.constant dense<0.000000e+00> : vector<2x32xf32>
    %60 = tpu.matmul %59, %21, %cst_34 {dimension_numbers = #tpu.dot_dimension_numbers<[1], [0], [0], [1], [0, 0, 1, 1], [], []>} : vector<2x32xf32>, vector<32x32xf32>, vector<2x32xf32> -> vector<2x32xf32>
    %61 = vector.broadcast %24 : vector<1x32xf32> to vector<2x32xf32>
    %62 = arith.addf %60, %61 : vector<2x32xf32>
    %cst_35 = arith.constant dense<0.000000e+00> : vector<2x32xf32>
    %63 = tpu.matmul %59, %22, %cst_35 {dimension_numbers = #tpu.dot_dimension_numbers<[1], [0], [0], [1], [0, 0, 1, 1], [], []>} : vector<2x32xf32>, vector<32x32xf32>, vector<2x32xf32> -> vector<2x32xf32>
    %64 = vector.broadcast %25 : vector<1x32xf32> to vector<2x32xf32>
    %65 = arith.addf %63, %64 : vector<2x32xf32>
    %cst_36 = arith.constant dense<0.000000e+00> : vector<2x32xf32>
    %66 = tpu.matmul %59, %23, %cst_36 {dimension_numbers = #tpu.dot_dimension_numbers<[1], [0], [0], [1], [0, 0, 1, 1], [], []>} : vector<2x32xf32>, vector<32x32xf32>, vector<2x32xf32> -> vector<2x32xf32>
    %67 = vector.broadcast %26 : vector<1x32xf32> to vector<2x32xf32>
    %68 = arith.addf %66, %67 : vector<2x32xf32>
    %69 = vector.extract_strided_slice %10 {offsets = [2, 0], sizes = [2, 32], strides = [1, 1]} : vector<16x32xf32> to vector<2x32xf32>
    %70 = arith.addf %69, %62 : vector<2x32xf32>
    %71 = arith.negf %70 : vector<2x32xf32>
    %72 = math.exp %71 : vector<2x32xf32>
    %cst_37 = arith.constant 1.000000e+00 : f32
    %73 = vector.broadcast %cst_37 : f32 to vector<2x32xf32>
    %74 = arith.addf %73, %72 : vector<2x32xf32>
    %75 = arith.divf %73, %74 : vector<2x32xf32>
    %76 = vector.extract_strided_slice %15 {offsets = [2, 0], sizes = [2, 32], strides = [1, 1]} : vector<16x32xf32> to vector<2x32xf32>
    %77 = arith.addf %76, %65 : vector<2x32xf32>
    %78 = arith.negf %77 : vector<2x32xf32>
    %79 = math.exp %78 : vector<2x32xf32>
    %cst_38 = arith.constant 1.000000e+00 : f32
    %80 = vector.broadcast %cst_38 : f32 to vector<2x32xf32>
    %81 = arith.addf %80, %79 : vector<2x32xf32>
    %82 = arith.divf %80, %81 : vector<2x32xf32>
    %83 = vector.extract_strided_slice %20 {offsets = [2, 0], sizes = [2, 32], strides = [1, 1]} : vector<16x32xf32> to vector<2x32xf32>
    %84 = arith.mulf %75, %68 : vector<2x32xf32>
    %85 = arith.addf %83, %84 : vector<2x32xf32>
    %86 = math.tanh %85 : vector<2x32xf32>
    %cst_39 = arith.constant 1.000000e+00 : f32
    %87 = vector.broadcast %cst_39 : f32 to vector<2x32xf32>
    %88 = arith.subf %87, %82 : vector<2x32xf32>
    %89 = arith.mulf %88, %86 : vector<2x32xf32>
    %90 = arith.mulf %82, %59 : vector<2x32xf32>
    %91 = arith.addf %89, %90 : vector<2x32xf32>
    %cst_40 = arith.constant dense<0.000000e+00> : vector<2x32xf32>
    %92 = tpu.matmul %91, %21, %cst_40 {dimension_numbers = #tpu.dot_dimension_numbers<[1], [0], [0], [1], [0, 0, 1, 1], [], []>} : vector<2x32xf32>, vector<32x32xf32>, vector<2x32xf32> -> vector<2x32xf32>
    %93 = vector.broadcast %24 : vector<1x32xf32> to vector<2x32xf32>
    %94 = arith.addf %92, %93 : vector<2x32xf32>
    %cst_41 = arith.constant dense<0.000000e+00> : vector<2x32xf32>
    %95 = tpu.matmul %91, %22, %cst_41 {dimension_numbers = #tpu.dot_dimension_numbers<[1], [0], [0], [1], [0, 0, 1, 1], [], []>} : vector<2x32xf32>, vector<32x32xf32>, vector<2x32xf32> -> vector<2x32xf32>
    %96 = vector.broadcast %25 : vector<1x32xf32> to vector<2x32xf32>
    %97 = arith.addf %95, %96 : vector<2x32xf32>
    %cst_42 = arith.constant dense<0.000000e+00> : vector<2x32xf32>
    %98 = tpu.matmul %91, %23, %cst_42 {dimension_numbers = #tpu.dot_dimension_numbers<[1], [0], [0], [1], [0, 0, 1, 1], [], []>} : vector<2x32xf32>, vector<32x32xf32>, vector<2x32xf32> -> vector<2x32xf32>
    %99 = vector.broadcast %26 : vector<1x32xf32> to vector<2x32xf32>
    %100 = arith.addf %98, %99 : vector<2x32xf32>
    %101 = vector.extract_strided_slice %10 {offsets = [4, 0], sizes = [2, 32], strides = [1, 1]} : vector<16x32xf32> to vector<2x32xf32>
    %102 = arith.addf %101, %94 : vector<2x32xf32>
    %103 = arith.negf %102 : vector<2x32xf32>
    %104 = math.exp %103 : vector<2x32xf32>
    %cst_43 = arith.constant 1.000000e+00 : f32
    %105 = vector.broadcast %cst_43 : f32 to vector<2x32xf32>
    %106 = arith.addf %105, %104 : vector<2x32xf32>
    %107 = arith.divf %105, %106 : vector<2x32xf32>
    %108 = vector.extract_strided_slice %15 {offsets = [4, 0], sizes = [2, 32], strides = [1, 1]} : vector<16x32xf32> to vector<2x32xf32>
    %109 = arith.addf %108, %97 : vector<2x32xf32>
    %110 = arith.negf %109 : vector<2x32xf32>
    %111 = math.exp %110 : vector<2x32xf32>
    %cst_44 = arith.constant 1.000000e+00 : f32
    %112 = vector.broadcast %cst_44 : f32 to vector<2x32xf32>
    %113 = arith.addf %112, %111 : vector<2x32xf32>
    %114 = arith.divf %112, %113 : vector<2x32xf32>
    %115 = vector.extract_strided_slice %20 {offsets = [4, 0], sizes = [2, 32], strides = [1, 1]} : vector<16x32xf32> to vector<2x32xf32>
    %116 = arith.mulf %107, %100 : vector<2x32xf32>
    %117 = arith.addf %115, %116 : vector<2x32xf32>
    %118 = math.tanh %117 : vector<2x32xf32>
    %cst_45 = arith.constant 1.000000e+00 : f32
    %119 = vector.broadcast %cst_45 : f32 to vector<2x32xf32>
    %120 = arith.subf %119, %114 : vector<2x32xf32>
    %121 = arith.mulf %120, %118 : vector<2x32xf32>
    %122 = arith.mulf %114, %91 : vector<2x32xf32>
    %123 = arith.addf %121, %122 : vector<2x32xf32>
    %cst_46 = arith.constant dense<0.000000e+00> : vector<2x32xf32>
    %124 = tpu.matmul %123, %21, %cst_46 {dimension_numbers = #tpu.dot_dimension_numbers<[1], [0], [0], [1], [0, 0, 1, 1], [], []>} : vector<2x32xf32>, vector<32x32xf32>, vector<2x32xf32> -> vector<2x32xf32>
    %125 = vector.broadcast %24 : vector<1x32xf32> to vector<2x32xf32>
    %126 = arith.addf %124, %125 : vector<2x32xf32>
    %cst_47 = arith.constant dense<0.000000e+00> : vector<2x32xf32>
    %127 = tpu.matmul %123, %22, %cst_47 {dimension_numbers = #tpu.dot_dimension_numbers<[1], [0], [0], [1], [0, 0, 1, 1], [], []>} : vector<2x32xf32>, vector<32x32xf32>, vector<2x32xf32> -> vector<2x32xf32>
    %128 = vector.broadcast %25 : vector<1x32xf32> to vector<2x32xf32>
    %129 = arith.addf %127, %128 : vector<2x32xf32>
    %cst_48 = arith.constant dense<0.000000e+00> : vector<2x32xf32>
    %130 = tpu.matmul %123, %23, %cst_48 {dimension_numbers = #tpu.dot_dimension_numbers<[1], [0], [0], [1], [0, 0, 1, 1], [], []>} : vector<2x32xf32>, vector<32x32xf32>, vector<2x32xf32> -> vector<2x32xf32>
    %131 = vector.broadcast %26 : vector<1x32xf32> to vector<2x32xf32>
    %132 = arith.addf %130, %131 : vector<2x32xf32>
    %133 = vector.extract_strided_slice %10 {offsets = [6, 0], sizes = [2, 32], strides = [1, 1]} : vector<16x32xf32> to vector<2x32xf32>
    %134 = arith.addf %133, %126 : vector<2x32xf32>
    %135 = arith.negf %134 : vector<2x32xf32>
    %136 = math.exp %135 : vector<2x32xf32>
    %cst_49 = arith.constant 1.000000e+00 : f32
    %137 = vector.broadcast %cst_49 : f32 to vector<2x32xf32>
    %138 = arith.addf %137, %136 : vector<2x32xf32>
    %139 = arith.divf %137, %138 : vector<2x32xf32>
    %140 = vector.extract_strided_slice %15 {offsets = [6, 0], sizes = [2, 32], strides = [1, 1]} : vector<16x32xf32> to vector<2x32xf32>
    %141 = arith.addf %140, %129 : vector<2x32xf32>
    %142 = arith.negf %141 : vector<2x32xf32>
    %143 = math.exp %142 : vector<2x32xf32>
    %cst_50 = arith.constant 1.000000e+00 : f32
    %144 = vector.broadcast %cst_50 : f32 to vector<2x32xf32>
    %145 = arith.addf %144, %143 : vector<2x32xf32>
    %146 = arith.divf %144, %145 : vector<2x32xf32>
    %147 = vector.extract_strided_slice %20 {offsets = [6, 0], sizes = [2, 32], strides = [1, 1]} : vector<16x32xf32> to vector<2x32xf32>
    %148 = arith.mulf %139, %132 : vector<2x32xf32>
    %149 = arith.addf %147, %148 : vector<2x32xf32>
    %150 = math.tanh %149 : vector<2x32xf32>
    %cst_51 = arith.constant 1.000000e+00 : f32
    %151 = vector.broadcast %cst_51 : f32 to vector<2x32xf32>
    %152 = arith.subf %151, %146 : vector<2x32xf32>
    %153 = arith.mulf %152, %150 : vector<2x32xf32>
    %154 = arith.mulf %146, %123 : vector<2x32xf32>
    %155 = arith.addf %153, %154 : vector<2x32xf32>
    %cst_52 = arith.constant dense<0.000000e+00> : vector<2x32xf32>
    %156 = tpu.matmul %155, %21, %cst_52 {dimension_numbers = #tpu.dot_dimension_numbers<[1], [0], [0], [1], [0, 0, 1, 1], [], []>} : vector<2x32xf32>, vector<32x32xf32>, vector<2x32xf32> -> vector<2x32xf32>
    %157 = vector.broadcast %24 : vector<1x32xf32> to vector<2x32xf32>
    %158 = arith.addf %156, %157 : vector<2x32xf32>
    %cst_53 = arith.constant dense<0.000000e+00> : vector<2x32xf32>
    %159 = tpu.matmul %155, %22, %cst_53 {dimension_numbers = #tpu.dot_dimension_numbers<[1], [0], [0], [1], [0, 0, 1, 1], [], []>} : vector<2x32xf32>, vector<32x32xf32>, vector<2x32xf32> -> vector<2x32xf32>
    %160 = vector.broadcast %25 : vector<1x32xf32> to vector<2x32xf32>
    %161 = arith.addf %159, %160 : vector<2x32xf32>
    %cst_54 = arith.constant dense<0.000000e+00> : vector<2x32xf32>
    %162 = tpu.matmul %155, %23, %cst_54 {dimension_numbers = #tpu.dot_dimension_numbers<[1], [0], [0], [1], [0, 0, 1, 1], [], []>} : vector<2x32xf32>, vector<32x32xf32>, vector<2x32xf32> -> vector<2x32xf32>
    %163 = vector.broadcast %26 : vector<1x32xf32> to vector<2x32xf32>
    %164 = arith.addf %162, %163 : vector<2x32xf32>
    %165 = vector.extract_strided_slice %10 {offsets = [8, 0], sizes = [2, 32], strides = [1, 1]} : vector<16x32xf32> to vector<2x32xf32>
    %166 = arith.addf %165, %158 : vector<2x32xf32>
    %167 = arith.negf %166 : vector<2x32xf32>
    %168 = math.exp %167 : vector<2x32xf32>
    %cst_55 = arith.constant 1.000000e+00 : f32
    %169 = vector.broadcast %cst_55 : f32 to vector<2x32xf32>
    %170 = arith.addf %169, %168 : vector<2x32xf32>
    %171 = arith.divf %169, %170 : vector<2x32xf32>
    %172 = vector.extract_strided_slice %15 {offsets = [8, 0], sizes = [2, 32], strides = [1, 1]} : vector<16x32xf32> to vector<2x32xf32>
    %173 = arith.addf %172, %161 : vector<2x32xf32>
    %174 = arith.negf %173 : vector<2x32xf32>
    %175 = math.exp %174 : vector<2x32xf32>
    %cst_56 = arith.constant 1.000000e+00 : f32
    %176 = vector.broadcast %cst_56 : f32 to vector<2x32xf32>
    %177 = arith.addf %176, %175 : vector<2x32xf32>
    %178 = arith.divf %176, %177 : vector<2x32xf32>
    %179 = vector.extract_strided_slice %20 {offsets = [8, 0], sizes = [2, 32], strides = [1, 1]} : vector<16x32xf32> to vector<2x32xf32>
    %180 = arith.mulf %171, %164 : vector<2x32xf32>
    %181 = arith.addf %179, %180 : vector<2x32xf32>
    %182 = math.tanh %181 : vector<2x32xf32>
    %cst_57 = arith.constant 1.000000e+00 : f32
    %183 = vector.broadcast %cst_57 : f32 to vector<2x32xf32>
    %184 = arith.subf %183, %178 : vector<2x32xf32>
    %185 = arith.mulf %184, %182 : vector<2x32xf32>
    %186 = arith.mulf %178, %155 : vector<2x32xf32>
    %187 = arith.addf %185, %186 : vector<2x32xf32>
    %cst_58 = arith.constant dense<0.000000e+00> : vector<2x32xf32>
    %188 = tpu.matmul %187, %21, %cst_58 {dimension_numbers = #tpu.dot_dimension_numbers<[1], [0], [0], [1], [0, 0, 1, 1], [], []>} : vector<2x32xf32>, vector<32x32xf32>, vector<2x32xf32> -> vector<2x32xf32>
    %189 = vector.broadcast %24 : vector<1x32xf32> to vector<2x32xf32>
    %190 = arith.addf %188, %189 : vector<2x32xf32>
    %cst_59 = arith.constant dense<0.000000e+00> : vector<2x32xf32>
    %191 = tpu.matmul %187, %22, %cst_59 {dimension_numbers = #tpu.dot_dimension_numbers<[1], [0], [0], [1], [0, 0, 1, 1], [], []>} : vector<2x32xf32>, vector<32x32xf32>, vector<2x32xf32> -> vector<2x32xf32>
    %192 = vector.broadcast %25 : vector<1x32xf32> to vector<2x32xf32>
    %193 = arith.addf %191, %192 : vector<2x32xf32>
    %cst_60 = arith.constant dense<0.000000e+00> : vector<2x32xf32>
    %194 = tpu.matmul %187, %23, %cst_60 {dimension_numbers = #tpu.dot_dimension_numbers<[1], [0], [0], [1], [0, 0, 1, 1], [], []>} : vector<2x32xf32>, vector<32x32xf32>, vector<2x32xf32> -> vector<2x32xf32>
    %195 = vector.broadcast %26 : vector<1x32xf32> to vector<2x32xf32>
    %196 = arith.addf %194, %195 : vector<2x32xf32>
    %197 = vector.extract_strided_slice %10 {offsets = [10, 0], sizes = [2, 32], strides = [1, 1]} : vector<16x32xf32> to vector<2x32xf32>
    %198 = arith.addf %197, %190 : vector<2x32xf32>
    %199 = arith.negf %198 : vector<2x32xf32>
    %200 = math.exp %199 : vector<2x32xf32>
    %cst_61 = arith.constant 1.000000e+00 : f32
    %201 = vector.broadcast %cst_61 : f32 to vector<2x32xf32>
    %202 = arith.addf %201, %200 : vector<2x32xf32>
    %203 = arith.divf %201, %202 : vector<2x32xf32>
    %204 = vector.extract_strided_slice %15 {offsets = [10, 0], sizes = [2, 32], strides = [1, 1]} : vector<16x32xf32> to vector<2x32xf32>
    %205 = arith.addf %204, %193 : vector<2x32xf32>
    %206 = arith.negf %205 : vector<2x32xf32>
    %207 = math.exp %206 : vector<2x32xf32>
    %cst_62 = arith.constant 1.000000e+00 : f32
    %208 = vector.broadcast %cst_62 : f32 to vector<2x32xf32>
    %209 = arith.addf %208, %207 : vector<2x32xf32>
    %210 = arith.divf %208, %209 : vector<2x32xf32>
    %211 = vector.extract_strided_slice %20 {offsets = [10, 0], sizes = [2, 32], strides = [1, 1]} : vector<16x32xf32> to vector<2x32xf32>
    %212 = arith.mulf %203, %196 : vector<2x32xf32>
    %213 = arith.addf %211, %212 : vector<2x32xf32>
    %214 = math.tanh %213 : vector<2x32xf32>
    %cst_63 = arith.constant 1.000000e+00 : f32
    %215 = vector.broadcast %cst_63 : f32 to vector<2x32xf32>
    %216 = arith.subf %215, %210 : vector<2x32xf32>
    %217 = arith.mulf %216, %214 : vector<2x32xf32>
    %218 = arith.mulf %210, %187 : vector<2x32xf32>
    %219 = arith.addf %217, %218 : vector<2x32xf32>
    %cst_64 = arith.constant dense<0.000000e+00> : vector<2x32xf32>
    %220 = tpu.matmul %219, %21, %cst_64 {dimension_numbers = #tpu.dot_dimension_numbers<[1], [0], [0], [1], [0, 0, 1, 1], [], []>} : vector<2x32xf32>, vector<32x32xf32>, vector<2x32xf32> -> vector<2x32xf32>
    %221 = vector.broadcast %24 : vector<1x32xf32> to vector<2x32xf32>
    %222 = arith.addf %220, %221 : vector<2x32xf32>
    %cst_65 = arith.constant dense<0.000000e+00> : vector<2x32xf32>
    %223 = tpu.matmul %219, %22, %cst_65 {dimension_numbers = #tpu.dot_dimension_numbers<[1], [0], [0], [1], [0, 0, 1, 1], [], []>} : vector<2x32xf32>, vector<32x32xf32>, vector<2x32xf32> -> vector<2x32xf32>
    %224 = vector.broadcast %25 : vector<1x32xf32> to vector<2x32xf32>
    %225 = arith.addf %223, %224 : vector<2x32xf32>
    %cst_66 = arith.constant dense<0.000000e+00> : vector<2x32xf32>
    %226 = tpu.matmul %219, %23, %cst_66 {dimension_numbers = #tpu.dot_dimension_numbers<[1], [0], [0], [1], [0, 0, 1, 1], [], []>} : vector<2x32xf32>, vector<32x32xf32>, vector<2x32xf32> -> vector<2x32xf32>
    %227 = vector.broadcast %26 : vector<1x32xf32> to vector<2x32xf32>
    %228 = arith.addf %226, %227 : vector<2x32xf32>
    %229 = vector.extract_strided_slice %10 {offsets = [12, 0], sizes = [2, 32], strides = [1, 1]} : vector<16x32xf32> to vector<2x32xf32>
    %230 = arith.addf %229, %222 : vector<2x32xf32>
    %231 = arith.negf %230 : vector<2x32xf32>
    %232 = math.exp %231 : vector<2x32xf32>
    %cst_67 = arith.constant 1.000000e+00 : f32
    %233 = vector.broadcast %cst_67 : f32 to vector<2x32xf32>
    %234 = arith.addf %233, %232 : vector<2x32xf32>
    %235 = arith.divf %233, %234 : vector<2x32xf32>
    %236 = vector.extract_strided_slice %15 {offsets = [12, 0], sizes = [2, 32], strides = [1, 1]} : vector<16x32xf32> to vector<2x32xf32>
    %237 = arith.addf %236, %225 : vector<2x32xf32>
    %238 = arith.negf %237 : vector<2x32xf32>
    %239 = math.exp %238 : vector<2x32xf32>
    %cst_68 = arith.constant 1.000000e+00 : f32
    %240 = vector.broadcast %cst_68 : f32 to vector<2x32xf32>
    %241 = arith.addf %240, %239 : vector<2x32xf32>
    %242 = arith.divf %240, %241 : vector<2x32xf32>
    %243 = vector.extract_strided_slice %20 {offsets = [12, 0], sizes = [2, 32], strides = [1, 1]} : vector<16x32xf32> to vector<2x32xf32>
    %244 = arith.mulf %235, %228 : vector<2x32xf32>
    %245 = arith.addf %243, %244 : vector<2x32xf32>
    %246 = math.tanh %245 : vector<2x32xf32>
    %cst_69 = arith.constant 1.000000e+00 : f32
    %247 = vector.broadcast %cst_69 : f32 to vector<2x32xf32>
    %248 = arith.subf %247, %242 : vector<2x32xf32>
    %249 = arith.mulf %248, %246 : vector<2x32xf32>
    %250 = arith.mulf %242, %219 : vector<2x32xf32>
    %251 = arith.addf %249, %250 : vector<2x32xf32>
    %cst_70 = arith.constant dense<0.000000e+00> : vector<2x32xf32>
    %252 = tpu.matmul %251, %21, %cst_70 {dimension_numbers = #tpu.dot_dimension_numbers<[1], [0], [0], [1], [0, 0, 1, 1], [], []>} : vector<2x32xf32>, vector<32x32xf32>, vector<2x32xf32> -> vector<2x32xf32>
    %253 = vector.broadcast %24 : vector<1x32xf32> to vector<2x32xf32>
    %254 = arith.addf %252, %253 : vector<2x32xf32>
    %cst_71 = arith.constant dense<0.000000e+00> : vector<2x32xf32>
    %255 = tpu.matmul %251, %22, %cst_71 {dimension_numbers = #tpu.dot_dimension_numbers<[1], [0], [0], [1], [0, 0, 1, 1], [], []>} : vector<2x32xf32>, vector<32x32xf32>, vector<2x32xf32> -> vector<2x32xf32>
    %256 = vector.broadcast %25 : vector<1x32xf32> to vector<2x32xf32>
    %257 = arith.addf %255, %256 : vector<2x32xf32>
    %cst_72 = arith.constant dense<0.000000e+00> : vector<2x32xf32>
    %258 = tpu.matmul %251, %23, %cst_72 {dimension_numbers = #tpu.dot_dimension_numbers<[1], [0], [0], [1], [0, 0, 1, 1], [], []>} : vector<2x32xf32>, vector<32x32xf32>, vector<2x32xf32> -> vector<2x32xf32>
    %259 = vector.broadcast %26 : vector<1x32xf32> to vector<2x32xf32>
    %260 = arith.addf %258, %259 : vector<2x32xf32>
    %261 = vector.extract_strided_slice %10 {offsets = [14, 0], sizes = [2, 32], strides = [1, 1]} : vector<16x32xf32> to vector<2x32xf32>
    %262 = arith.addf %261, %254 : vector<2x32xf32>
    %263 = arith.negf %262 : vector<2x32xf32>
    %264 = math.exp %263 : vector<2x32xf32>
    %cst_73 = arith.constant 1.000000e+00 : f32
    %265 = vector.broadcast %cst_73 : f32 to vector<2x32xf32>
    %266 = arith.addf %265, %264 : vector<2x32xf32>
    %267 = arith.divf %265, %266 : vector<2x32xf32>
    %268 = vector.extract_strided_slice %15 {offsets = [14, 0], sizes = [2, 32], strides = [1, 1]} : vector<16x32xf32> to vector<2x32xf32>
    %269 = arith.addf %268, %257 : vector<2x32xf32>
    %270 = arith.negf %269 : vector<2x32xf32>
    %271 = math.exp %270 : vector<2x32xf32>
    %cst_74 = arith.constant 1.000000e+00 : f32
    %272 = vector.broadcast %cst_74 : f32 to vector<2x32xf32>
    %273 = arith.addf %272, %271 : vector<2x32xf32>
    %274 = arith.divf %272, %273 : vector<2x32xf32>
    %275 = vector.extract_strided_slice %20 {offsets = [14, 0], sizes = [2, 32], strides = [1, 1]} : vector<16x32xf32> to vector<2x32xf32>
    %276 = arith.mulf %267, %260 : vector<2x32xf32>
    %277 = arith.addf %275, %276 : vector<2x32xf32>
    %278 = math.tanh %277 : vector<2x32xf32>
    %cst_75 = arith.constant 1.000000e+00 : f32
    %279 = vector.broadcast %cst_75 : f32 to vector<2x32xf32>
    %280 = arith.subf %279, %274 : vector<2x32xf32>
    %281 = arith.mulf %280, %278 : vector<2x32xf32>
    %282 = arith.mulf %274, %251 : vector<2x32xf32>
    %283 = arith.addf %281, %282 : vector<2x32xf32>
    %284 = arith.truncf %283 : vector<2x32xf32> to vector<2x32xbf16>
    %c0_76 = arith.constant 0 : index
    %c0_77 = arith.constant 0 : index
    %285 = vector.load %arg2[%c0_76, %c0_77] : memref<16x32xf32, #tpu.memory_space<vmem>>, vector<16x32xf32>
    %286 = arith.truncf %285 : vector<16x32xf32> to vector<16x32xbf16>
    %c0_78 = arith.constant 0 : index
    %c0_79 = arith.constant 0 : index
    %287 = vector.load %arg15[%c0_78, %c0_79] : memref<32x64xbf16, #tpu.memory_space<vmem>>, vector<32x64xbf16>
    %cst_80 = arith.constant dense<0.000000e+00> : vector<16x64xf32>
    %288 = tpu.matmul %286, %287, %cst_80 {dimension_numbers = #tpu.dot_dimension_numbers<[1], [0], [0], [1], [0, 0, 1, 1], [], []>} : vector<16x32xbf16>, vector<32x64xbf16>, vector<16x64xf32> -> vector<16x64xf32>
    %289 = vector.shape_cast %288 : vector<16x64xf32> to vector<2x8x64xf32>
    %c0_81 = arith.constant 0 : index
    %c0_82 = arith.constant 0 : index
    %290 = vector.load %arg16[%c0_81, %c0_82] : memref<32x64xbf16, #tpu.memory_space<vmem>>, vector<32x64xbf16>
    %cst_83 = arith.constant dense<0.000000e+00> : vector<2x64xf32>
    %291 = tpu.matmul %284, %290, %cst_83 {dimension_numbers = #tpu.dot_dimension_numbers<[1], [0], [0], [1], [0, 0, 1, 1], [], []>} : vector<2x32xbf16>, vector<32x64xbf16>, vector<2x64xf32> -> vector<2x64xf32>
    %292 = vector.shape_cast %291 : vector<2x64xf32> to vector<2x1x64xf32>
    %293 = vector.broadcast %292 : vector<2x1x64xf32> to vector<2x8x64xf32>
    %294 = arith.addf %289, %293 : vector<2x8x64xf32>
    %c0_84 = arith.constant 0 : index
    %c0_85 = arith.constant 0 : index
    %295 = vector.load %arg17[%c0_84, %c0_85] : memref<32x64xbf16, #tpu.memory_space<vmem>>, vector<32x64xbf16>
    %cst_86 = arith.constant dense<0.000000e+00> : vector<16x64xf32>
    %296 = tpu.matmul %286, %295, %cst_86 {dimension_numbers = #tpu.dot_dimension_numbers<[1], [0], [0], [1], [0, 0, 1, 1], [], []>} : vector<16x32xbf16>, vector<32x64xbf16>, vector<16x64xf32> -> vector<16x64xf32>
    %297 = vector.shape_cast %296 : vector<16x64xf32> to vector<2x8x64xf32>
    %c0_87 = arith.constant 0 : index
    %c0_88 = arith.constant 0 : index
    %298 = vector.load %arg18[%c0_87, %c0_88] : memref<32x64xbf16, #tpu.memory_space<vmem>>, vector<32x64xbf16>
    %cst_89 = arith.constant dense<0.000000e+00> : vector<2x64xf32>
    %299 = tpu.matmul %284, %298, %cst_89 {dimension_numbers = #tpu.dot_dimension_numbers<[1], [0], [0], [1], [0, 0, 1, 1], [], []>} : vector<2x32xbf16>, vector<32x64xbf16>, vector<2x64xf32> -> vector<2x64xf32>
    %300 = vector.shape_cast %299 : vector<2x64xf32> to vector<2x1x64xf32>
    %301 = vector.broadcast %300 : vector<2x1x64xf32> to vector<2x8x64xf32>
    %302 = arith.addf %297, %301 : vector<2x8x64xf32>
    %303 = vector.shape_cast %294 : vector<2x8x64xf32> to vector<2x8x1x64xf32>
    %304 = vector.shape_cast %302 : vector<2x8x64xf32> to vector<2x1x8x64xf32>
    %305 = vector.broadcast %303 : vector<2x8x1x64xf32> to vector<2x8x8x64xf32>
    %306 = vector.broadcast %304 : vector<2x1x8x64xf32> to vector<2x8x8x64xf32>
    %307 = arith.addf %305, %306 : vector<2x8x8x64xf32>
    %c0_90 = arith.constant 0 : index
    %c0_91 = arith.constant 0 : index
    %308 = vector.load %arg19[%c0_90, %c0_91] : memref<1x64xf32, #tpu.memory_space<vmem>>, vector<1x64xf32>
    %309 = vector.shape_cast %308 : vector<1x64xf32> to vector<1x1x1x64xf32>
    %310 = vector.broadcast %309 : vector<1x1x1x64xf32> to vector<2x8x8x64xf32>
    %311 = arith.addf %307, %310 : vector<2x8x8x64xf32>
    %cst_92 = arith.constant 0.000000e+00 : f32
    %312 = vector.broadcast %cst_92 : f32 to vector<2x8x8x64xf32>
    %313 = arith.maximumf %311, %312 : vector<2x8x8x64xf32>
    %314 = vector.shape_cast %313 : vector<2x8x8x64xf32> to vector<128x64xf32>
    %315 = arith.truncf %314 : vector<128x64xf32> to vector<128x64xbf16>
    %c0_93 = arith.constant 0 : index
    %c0_94 = arith.constant 0 : index
    %316 = vector.load %arg20[%c0_93, %c0_94] : memref<64x64xbf16, #tpu.memory_space<vmem>>, vector<64x64xbf16>
    %cst_95 = arith.constant dense<0.000000e+00> : vector<128x64xf32>
    %317 = tpu.matmul %315, %316, %cst_95 {dimension_numbers = #tpu.dot_dimension_numbers<[1], [0], [0], [1], [0, 0, 1, 1], [], []>} : vector<128x64xbf16>, vector<64x64xbf16>, vector<128x64xf32> -> vector<128x64xf32>
    %c0_96 = arith.constant 0 : index
    %c0_97 = arith.constant 0 : index
    %318 = vector.load %arg21[%c0_96, %c0_97] : memref<1x64xf32, #tpu.memory_space<vmem>>, vector<1x64xf32>
    %319 = vector.broadcast %318 : vector<1x64xf32> to vector<128x64xf32>
    %320 = arith.addf %317, %319 : vector<128x64xf32>
    %cst_98 = arith.constant 0.000000e+00 : f32
    %321 = vector.broadcast %cst_98 : f32 to vector<128x64xf32>
    %322 = arith.maximumf %320, %321 : vector<128x64xf32>
    %c0_99 = arith.constant 0 : index
    %c0_100 = arith.constant 0 : index
    %323 = vector.load %arg28[%c0_99, %c0_100] : memref<2x128xf32, #tpu.memory_space<vmem>>, vector<2x128xf32>
    %cst_101 = arith.constant dense<0.000000e+00> : vector<2x64xf32>
    %324 = tpu.matmul %323, %322, %cst_101 {dimension_numbers = #tpu.dot_dimension_numbers<[1], [0], [0], [1], [0, 0, 1, 1], [], []>} : vector<2x128xf32>, vector<128x64xf32>, vector<2x64xf32> -> vector<2x64xf32>
    %325 = arith.truncf %324 : vector<2x64xf32> to vector<2x64xbf16>
    %c0_102 = arith.constant 0 : index
    %c0_103 = arith.constant 0 : index
    %326 = vector.load %arg22[%c0_102, %c0_103] : memref<64x64xbf16, #tpu.memory_space<vmem>>, vector<64x64xbf16>
    %cst_104 = arith.constant dense<0.000000e+00> : vector<2x64xf32>
    %327 = tpu.matmul %325, %326, %cst_104 {dimension_numbers = #tpu.dot_dimension_numbers<[1], [0], [0], [1], [0, 0, 1, 1], [], []>} : vector<2x64xbf16>, vector<64x64xbf16>, vector<2x64xf32> -> vector<2x64xf32>
    %c0_105 = arith.constant 0 : index
    %c0_106 = arith.constant 0 : index
    %328 = vector.load %arg23[%c0_105, %c0_106] : memref<1x64xf32, #tpu.memory_space<vmem>>, vector<1x64xf32>
    %329 = vector.broadcast %328 : vector<1x64xf32> to vector<2x64xf32>
    %330 = arith.addf %327, %329 : vector<2x64xf32>
    %cst_107 = arith.constant 0.000000e+00 : f32
    %331 = vector.broadcast %cst_107 : f32 to vector<2x64xf32>
    %332 = arith.maximumf %330, %331 : vector<2x64xf32>
    %333 = arith.truncf %332 : vector<2x64xf32> to vector<2x64xbf16>
    %c0_108 = arith.constant 0 : index
    %c0_109 = arith.constant 0 : index
    %334 = vector.load %arg24[%c0_108, %c0_109] : memref<64x32xbf16, #tpu.memory_space<vmem>>, vector<64x32xbf16>
    %cst_110 = arith.constant dense<0.000000e+00> : vector<2x32xf32>
    %335 = tpu.matmul %333, %334, %cst_110 {dimension_numbers = #tpu.dot_dimension_numbers<[1], [0], [0], [1], [0, 0, 1, 1], [], []>} : vector<2x64xbf16>, vector<64x32xbf16>, vector<2x32xf32> -> vector<2x32xf32>
    %c0_111 = arith.constant 0 : index
    %c0_112 = arith.constant 0 : index
    %336 = vector.load %arg25[%c0_111, %c0_112] : memref<1x32xf32, #tpu.memory_space<vmem>>, vector<1x32xf32>
    %337 = vector.broadcast %336 : vector<1x32xf32> to vector<2x32xf32>
    %338 = arith.addf %335, %337 : vector<2x32xf32>
    %cst_113 = arith.constant 0.000000e+00 : f32
    %339 = vector.broadcast %cst_113 : f32 to vector<2x32xf32>
    %340 = arith.maximumf %338, %339 : vector<2x32xf32>
    %341 = arith.truncf %340 : vector<2x32xf32> to vector<2x32xbf16>
    %c0_114 = arith.constant 0 : index
    %c0_115 = arith.constant 0 : index
    %342 = vector.load %arg26[%c0_114, %c0_115] : memref<32x128xbf16, #tpu.memory_space<vmem>>, vector<32x128xbf16>
    %cst_116 = arith.constant dense<0.000000e+00> : vector<2x128xf32>
    %343 = tpu.matmul %341, %342, %cst_116 {dimension_numbers = #tpu.dot_dimension_numbers<[1], [0], [0], [1], [0, 0, 1, 1], [], []>} : vector<2x32xbf16>, vector<32x128xbf16>, vector<2x128xf32> -> vector<2x128xf32>
    %c0_117 = arith.constant 0 : index
    %c0_118 = arith.constant 0 : index
    %344 = vector.load %arg27[%c0_117, %c0_118] : memref<1x128xf32, #tpu.memory_space<vmem>>, vector<1x128xf32>
    %345 = vector.broadcast %344 : vector<1x128xf32> to vector<2x128xf32>
    %346 = arith.addf %343, %345 : vector<2x128xf32>
    %c0_119 = arith.constant 0 : index
    %c0_120 = arith.constant 0 : index
    %347 = vector.load %arg29[%c0_119, %c0_120] : memref<2x128xf32, #tpu.memory_space<vmem>>, vector<2x128xf32>
    tpu.vector_store %arg29[%c0_119, %c0_120], %346 {strides = array<i32>} : memref<2x128xf32, #tpu.memory_space<vmem>>, vector<2x128xf32>,
    return
  }
  func.func @transform_0(%arg0: i32) -> (i32, i32) {
    %c0_i32 = arith.constant 0 : i32
    %c0_i32_0 = arith.constant 0 : i32
    %c0_i32_1 = arith.constant 0 : i32
    return %c0_i32, %c0_i32_0 : i32, i32
  }
  func.func @transform_1(%arg0: i32) -> (i32, i32) {
    %c0_i32 = arith.constant 0 : i32
    %c0_i32_0 = arith.constant 0 : i32
    %c0_i32_1 = arith.constant 0 : i32
    return %c0_i32, %c0_i32_0 : i32, i32
  }
  func.func @transform_2(%arg0: i32) -> (i32, i32) {
    %c0_i32 = arith.constant 0 : i32
    %c0_i32_0 = arith.constant 0 : i32
    %c0_i32_1 = arith.constant 0 : i32
    return %c0_i32, %c0_i32_0 : i32, i32
  }
  func.func @transform_3(%arg0: i32) -> (i32, i32) {
    %c0_i32 = arith.constant 0 : i32
    %c0_i32_0 = arith.constant 0 : i32
    %c0_i32_1 = arith.constant 0 : i32
    return %c0_i32, %c0_i32_0 : i32, i32
  }
  func.func @transform_4(%arg0: i32) -> (i32, i32) {
    %c0_i32 = arith.constant 0 : i32
    %c0_i32_0 = arith.constant 0 : i32
    %c0_i32_1 = arith.constant 0 : i32
    return %c0_i32, %c0_i32_0 : i32, i32
  }
  func.func @transform_5(%arg0: i32) -> (i32, i32) {
    %c0_i32 = arith.constant 0 : i32
    %c0_i32_0 = arith.constant 0 : i32
    %c0_i32_1 = arith.constant 0 : i32
    return %c0_i32, %c0_i32_0 : i32, i32
  }
  func.func @transform_6(%arg0: i32) -> (i32, i32) {
    %c0_i32 = arith.constant 0 : i32
    %c0_i32_0 = arith.constant 0 : i32
    %c0_i32_1 = arith.constant 0 : i32
    return %c0_i32, %c0_i32_0 : i32, i32
  }
  func.func @transform_7(%arg0: i32) -> (i32, i32) {
    %c0_i32 = arith.constant 0 : i32
    %c0_i32_0 = arith.constant 0 : i32
    %c0_i32_1 = arith.constant 0 : i32
    return %c0_i32, %c0_i32_0 : i32, i32
  }
  func.func @transform_8(%arg0: i32) -> (i32, i32) {
    %c0_i32 = arith.constant 0 : i32
    %c0_i32_0 = arith.constant 0 : i32
    %c0_i32_1 = arith.constant 0 : i32
    return %c0_i32, %c0_i32_0 : i32, i32
  }
  func.func @transform_9(%arg0: i32) -> (i32, i32) {
    %c0_i32 = arith.constant 0 : i32
    %c0_i32_0 = arith.constant 0 : i32
    %c0_i32_1 = arith.constant 0 : i32
    return %c0_i32, %c0_i32_0 : i32, i32
  }
  func.func @transform_10(%arg0: i32) -> (i32, i32) {
    %c0_i32 = arith.constant 0 : i32
    %c0_i32_0 = arith.constant 0 : i32
    %c0_i32_1 = arith.constant 0 : i32
    return %c0_i32, %c0_i32_0 : i32, i32
  }
  func.func @transform_11(%arg0: i32) -> (i32, i32) {
    %c0_i32 = arith.constant 0 : i32
    %c0_i32_0 = arith.constant 0 : i32
    %c0_i32_1 = arith.constant 0 : i32
    return %c0_i32, %c0_i32_0 : i32, i32
  }
  func.func @transform_12(%arg0: i32) -> (i32, i32) {
    %c0_i32 = arith.constant 0 : i32
    %c0_i32_0 = arith.constant 0 : i32
    %c0_i32_1 = arith.constant 0 : i32
    return %c0_i32, %c0_i32_0 : i32, i32
  }
  func.func @transform_13(%arg0: i32) -> (i32, i32) {
    %c0_i32 = arith.constant 0 : i32
    %c0_i32_0 = arith.constant 0 : i32
    %c0_i32_1 = arith.constant 0 : i32
    return %c0_i32, %c0_i32_0 : i32, i32
  }
  func.func @transform_14(%arg0: i32) -> (i32, i32) {
    %c0_i32 = arith.constant 0 : i32
    %c0_i32_0 = arith.constant 0 : i32
    %c0_i32_1 = arith.constant 0 : i32
    return %c0_i32, %c0_i32_0 : i32, i32
  }
  func.func @transform_15(%arg0: i32) -> (i32, i32) {
    %c0_i32 = arith.constant 0 : i32
    %c0_i32_0 = arith.constant 0 : i32
    %c0_i32_1 = arith.constant 0 : i32
    return %c0_i32, %c0_i32_0 : i32, i32
  }
  func.func @transform_16(%arg0: i32) -> (i32, i32) {
    %c0_i32 = arith.constant 0 : i32
    %c0_i32_0 = arith.constant 0 : i32
    %c0_i32_1 = arith.constant 0 : i32
    return %c0_i32, %c0_i32_0 : i32, i32
  }
  func.func @transform_17(%arg0: i32) -> (i32, i32) {
    %c0_i32 = arith.constant 0 : i32
    %c0_i32_0 = arith.constant 0 : i32
    %c0_i32_1 = arith.constant 0 : i32
    return %c0_i32, %c0_i32_0 : i32, i32
  }
  func.func @transform_18(%arg0: i32) -> (i32, i32) {
    %c0_i32 = arith.constant 0 : i32
    %c0_i32_0 = arith.constant 0 : i32
    %c0_i32_1 = arith.constant 0 : i32
    return %c0_i32, %c0_i32_0 : i32, i32
  }
  func.func @transform_19(%arg0: i32) -> (i32, i32) {
    %c0_i32 = arith.constant 0 : i32
    %c0_i32_0 = arith.constant 0 : i32
    %c0_i32_1 = arith.constant 0 : i32
    return %c0_i32, %c0_i32_0 : i32, i32
  }
  func.func @transform_20(%arg0: i32) -> (i32, i32) {
    %c0_i32 = arith.constant 0 : i32
    %c0_i32_0 = arith.constant 0 : i32
    %c0_i32_1 = arith.constant 0 : i32
    return %c0_i32, %c0_i32_0 : i32, i32
  }
  func.func @transform_21(%arg0: i32) -> (i32, i32) {
    %c0_i32 = arith.constant 0 : i32
    %c0_i32_0 = arith.constant 0 : i32
    %c0_i32_1 = arith.constant 0 : i32
    return %c0_i32, %c0_i32_0 : i32, i32
  }
  func.func @transform_22(%arg0: i32) -> (i32, i32) {
    %c0_i32 = arith.constant 0 : i32
    %c0_i32_0 = arith.constant 0 : i32
    %c0_i32_1 = arith.constant 0 : i32
    return %c0_i32, %c0_i32_0 : i32, i32
  }
  func.func @transform_23(%arg0: i32) -> (i32, i32) {
    %c0_i32 = arith.constant 0 : i32
    %c0_i32_0 = arith.constant 0 : i32
    %c0_i32_1 = arith.constant 0 : i32
    return %c0_i32, %c0_i32_0 : i32, i32
  }
  func.func @transform_24(%arg0: i32) -> (i32, i32) {
    %c0_i32 = arith.constant 0 : i32
    %c0_i32_0 = arith.constant 0 : i32
    %c0_i32_1 = arith.constant 0 : i32
    return %c0_i32, %c0_i32_0 : i32, i32
  }
  func.func @transform_25(%arg0: i32) -> (i32, i32) {
    %c0_i32 = arith.constant 0 : i32
    %c0_i32_0 = arith.constant 0 : i32
    %c0_i32_1 = arith.constant 0 : i32
    return %c0_i32, %c0_i32_0 : i32, i32
  }
  func.func @transform_26(%arg0: i32) -> (i32, i32) {
    %c0_i32 = arith.constant 0 : i32
    %c0_i32_0 = arith.constant 0 : i32
    %c0_i32_1 = arith.constant 0 : i32
    return %c0_i32, %c0_i32_0 : i32, i32
  }
  func.func @transform_27(%arg0: i32) -> (i32, i32) {
    %c0_i32 = arith.constant 0 : i32
    %c0_i32_0 = arith.constant 0 : i32
    %c0_i32_1 = arith.constant 0 : i32
    return %c0_i32, %c0_i32_0 : i32, i32
  }
  func.func @transform_28(%arg0: i32) -> (i32, i32) {
    %c0_i32 = arith.constant 0 : i32
    %c0_i32_0 = arith.constant 0 : i32
    %c0_i32_1 = arith.constant 0 : i32
    return %c0_i32, %c0_i32_0 : i32, i32
  }
}

</mosaic_0001>

<bundles_post_ra>
// kernel: _forward_jit.1
= control target key start
LH: loop header
LB: loop body
LE: loop exit
PB: predicated region body
PF: predicated region fallthrough
CT: control target
= control target key end

     0   :  { %s5301_s0 = inlined_call_operand.vmem [shape: s32[16,1], index: 0, kind: input, shape index: {}]   ;;  %s5302_s1 = inlined_call_operand.vmem [shape: f32[16,32], index: 1, kind: input, shape index: {}]   ;;  %s5303_s2 = inlined_call_operand.vmem [shape: f32[50,32], index: 2, kind: input, shape index: {}]   ;;  %s5304_s3 = inlined_call_operand.vmem [shape: f32[50,32], index: 3, kind: input, shape index: {}]   ;;  %s5305_s4 = inlined_call_operand.vmem [shape: f32[50,32], index: 4, kind: input, shape index: {}]   ;;  %s5306_s5 = inlined_call_operand.vmem [shape: f32[32,32], index: 5, kind: input, shape index: {}]   ;;  %s5307_s6 = inlined_call_operand.vmem [shape: f32[32,32], index: 6, kind: input, shape index: {}]   ;;  %s5308_s7 = inlined_call_operand.vmem [shape: f32[32,32], index: 7, kind: input, shape index: {}]   ;;  %s5309_s8 = inlined_call_operand.vmem [shape: f32[1,32], index: 8, kind: input, shape index: {}]   ;;  %s5310_s9 = inlined_call_operand.vmem [shape: f32[1,32], index: 9, kind: input, shape index: {}]   ;;  %s5311_s10 = inlined_call_operand.vmem [shape: f32[1,32], index: 10, kind: input, shape index: {}]   ;;  %s5312_s11 = inlined_call_operand.hbm [shape: f32[1,32], index: 11, kind: input, shape index: {}]   ;;  %s5313_s12 = inlined_call_operand.hbm [shape: f32[1,32], index: 12, kind: input, shape index: {}]   ;;  %s5314_s13 = inlined_call_operand.hbm [shape: f32[1,32], index: 13, kind: input, shape index: {}]   ;;  %s5315_s14 = inlined_call_operand.vmem [shape: bf16[32,64], index: 14, kind: input, shape index: {}]   ;;  %s5316_s15 = inlined_call_operand.vmem [shape: bf16[32,64], index: 15, kind: input, shape index: {}]   ;;  %s5317_s16 = inlined_call_operand.vmem [shape: bf16[32,64], index: 16, kind: input, shape index: {}]   ;;  %s5318_s17 = inlined_call_operand.vmem [shape: bf16[32,64], index: 17, kind: input, shape index: {}]   ;;  %s5319_s18 = inlined_call_operand.vmem [shape: f32[1,64], index: 18, kind: input, shape index: {}]   ;;  %s5320_s19 = inlined_call_operand.vmem [shape: bf16[64,64], index: 19, kind: input, shape index: {}]   ;;  %s5321_s20 = inlined_call_operand.vmem [shape: f32[1,64], index: 20, kind: input, shape index: {}]   ;;  %s5322_s21 = inlined_call_operand.vmem [shape: bf16[64,64], index: 21, kind: input, shape index: {}]   ;;  %s5323_s22 = inlined_call_operand.vmem [shape: f32[1,64], index: 22, kind: input, shape index: {}]   ;;  %s5324_s23 = inlined_call_operand.vmem [shape: bf16[64,32], index: 23, kind: input, shape index: {}]   ;;  %s5325_s24 = inlined_call_operand.vmem [shape: f32[1,32], index: 24, kind: input, shape index: {}]   ;;  %s5326_s25 = inlined_call_operand.vmem [shape: bf16[32,128], index: 25, kind: input, shape index: {}]   ;;  %s5327_s26 = inlined_call_operand.vmem [shape: f32[1,128], index: 26, kind: input, shape index: {}]   ;;  %s5328_s27 = inlined_call_operand.vmem [shape: f32[2,128], index: 27, kind: input, shape index: {}]   ;;  %s5329_s28 = inlined_call_operand.hbm [shape: f32[2,128], index: 28, kind: output, shape index: {}]  }
   0x1   :  { %5338 = sst [smem:[#allocation12_spill]] %s5301_s0 }
   0x2   :  { %5339 = sst [smem:[#allocation13_spill]] %s5302_s1 }
   0x3   :  { %5340 = sst [smem:[#allocation14_spill]] %s5303_s2 }
   0x4   :  { %5341 = sst [smem:[#allocation15_spill]] %s5304_s3 }
   0x5   :  { %5342 = sst [smem:[#allocation16_spill]] %s5305_s4 }
   0x6   :  { %5343 = sst [smem:[#allocation17_spill]] %s5306_s5 }
   0x7   :  { %5344 = sst [smem:[#allocation18_spill]] %s5307_s6 }
   0x8   :  { %5345 = sst [smem:[#allocation19_spill]] %s5308_s7 }
   0x9   :  { %5346 = sst [smem:[#allocation20_spill]] %s5309_s8 }
   0xa   :  { %5347 = sst [smem:[#allocation21_spill]] %s5310_s9 }
   0xb   :  { %5348 = sst [smem:[#allocation22_spill]] %s5311_s10 }
   0xc   :  { %5349 = sst [smem:[#allocation23_spill]] %s5312_s11 }
   0xd   :  { %5350 = sst [smem:[#allocation24_spill]] %s5313_s12 }
   0xe   :  { %33 = vsyncpa [#allocation3], 0 }
   0xf   :  { %34 = vsyncpa [#allocation6], 0 }
  0x10   :  { %35 = vsyncpa [#allocation4], 0  ;;  %s4387_s8 = smov [#allocation5]   ;;  %s4388_s9 = smov [#allocation2]  }
  0x11   :  { %s74_s5 = sshll.u32 %s4387_s8, 4  ;;  %s64_s30 = sshll.u32 %s4388_s9, 4  ;;  %s75_s5 = int_to_ptr.vmem [resolvable:$true] %s74_s5  ;;  %s65_s30 = int_to_ptr.vmem [resolvable:$true] %s64_s30 }
  0x12   :  { %s4309_s3 = scalar_lea.vmem %s75_s5, 16  ;;  %s4313_s6 = scalar_lea.vmem %s75_s5, 32 }
  0x13   :  { %p4310_p0 = scmp.ne.s32.totalorder %s75_s5, %s4309_s3  ;;  %p4314_p1 = scmp.lt.s32.totalorder %s75_s5, %s75_s5 }
  0x14   :  { %p4315_p2 = scmp.lt.s32.totalorder %s4313_s6, %s4309_s3 }
  0x16   :  { %p4316_p3 = por %p4315_p2, %p4314_p1 }
  0x18   :  { %p4317_p4 = pnand %p4316_p3, %p4310_p0 }
  0x1a   :  { %4320 = shalt.err (!%p4317_p4)
}
  0x1b   :  { %s5351_s11 = sld [smem:[#allocation24_spill]]  ;;  %s4329_s29 = scalar_lea.vmem %s65_s30, 16 }
  0x1c   :  { %p4330_p5 = scmp.ne.s32.totalorder %s65_s30, %s4329_s29  ;;  %s4333_s2 = scalar_lea.vmem %s65_s30, 32 }
  0x1d   :  { %p4334_p6 = scmp.lt.s32.totalorder %s65_s30, %s65_s30  ;;  %p4335_p7 = scmp.lt.s32.totalorder %s4333_s2, %s4329_s29 }
  0x1f   :  { %p4336_p8 = por %p4335_p7, %p4334_p6 }
  0x21   :  { %77 = dma.hbm_to_vmem [thread:$0]  %s5351_s11, 16, %s75_s5, [#allocation6]  }
  0x22   :  { %p4337_p9 = pnand %p4336_p8, %p4330_p5 }
  0x24   :  { %4340 = shalt.err (!%p4337_p9)
}
  0x25   :  { %s5352_s1 = sld [smem:[#allocation23_spill]]  ;;  %s4389_s4 = smov [#allocation7]  }
  0x26   :  { %s84_s8 = sshll.u32 %s4389_s4, 4  ;;  %s85_s8 = int_to_ptr.vmem [resolvable:$true] %s84_s8 }
  0x27   :  { %s4349_s9 = scalar_lea.vmem %s85_s8, 16  ;;  %s4353_s3 = scalar_lea.vmem %s85_s8, 32 }
  0x28   :  { %p4350_p10 = scmp.ne.s32.totalorder %s85_s8, %s4349_s9  ;;  %p4354_p11 = scmp.lt.s32.totalorder %s85_s8, %s85_s8 }
  0x29   :  { %p4355_p12 = scmp.lt.s32.totalorder %s4353_s3, %s4349_s9 }
  0x2b   :  { %67 = dma.hbm_to_vmem [thread:$0]  %s5352_s1, 16, %s65_s30, [#allocation3]  }
  0x2c   :  { %p4356_p13 = por %p4355_p12, %p4354_p11 }
  0x2e   :  { %p4357_p0 = pnand %p4356_p13, %p4350_p10 }
  0x30   :  { %4360 = shalt.err (!%p4357_p0)
}
  0x31   :  { %87 = dma.hbm_to_vmem [thread:$0]  %s5314_s13, 16, %s85_s8, [#allocation6]  }
  0x32   :  { %4381 = dma.done.wait [#allocation3], 16  }
  0x33   :  { %4382 = vsyncadd [#allocation3], 4294967280 }
  0x34   :  { %4383 = dma.done.wait [#allocation6], 32  }
  0x35   :  { %4384 = vsyncadd [#allocation6], 4294967264  ;;  %v4390_v0 = vmov 0   ;;  %vm163_vm0 = vcmask 1041408   ;;  %s5353_s0 = sld [smem:[#allocation12_spill]]  ;;  %v4391_v18 = vmov 0.0   ;;  %v128_v19 = vlaneseq }
  0x36   :  { %4198 = vset.pattern.permute.xlu0 %v4390_v0  ;;  %s5354_s2 = sld [smem:[#allocation14_spill]]  ;;  %vm156_vm1 = vcmask 408576   ;;  %vm4392_vm4 = vmmov 0   ;;  %v4758_v51 = vld [vmem:[#allocation2] ss:$0 sm:$0xff]  ;;  %vm447_vm5 = vcmask 261120  }
  0x37   :  { %s5355_s12 = sld [smem:[#allocation15_spill]]  ;;  %v129_v20 = vand.u32 127, %v128_v19  ;;  %v4769_v61 = vld [vmem:[#allocation5] ss:$0 sm:$0xff]  ;;  %vm2994_vm6 = vcmask 523264  }
  0x38   :  { %s5356_s1 = sld [smem:[#allocation16_spill]] }
  0x39   :  { %s5357_s4 = sld [smem:[#allocation17_spill]] }
  0x3a   :  { %s5360_s11 = sld [smem:[#allocation20_spill]] }
  0x3b   :  { %v126_v1 = vld [vmem:[%s5353_s0] sm:$0xff]  ;;  %v127_v6 = vld [vmem:[%s5353_s0 + $0x8] sm:$0xff]  ;;  %s5361_s7 = sld [smem:[#allocation21_spill]] }
  0x3c   :  { %v148_v2 = vld [vmem:[%s5354_s2 + $0x30] sm:$0x3]  ;;  %131 = vperm.xlu0 %4198, %v126_v1   ;;  %v147_v4 = vld [vmem:[%s5354_s2 + $0x28] sm:$0xff]  ;;  %v146_v7 = vld [vmem:[%s5354_s2 + $0x20] sm:$0xff]  ;;  %s5363_s0 = sld [smem:[#allocation13_spill]] }
  0x3d   :  { %3752 = vmatprep.subr.msk.mxu0 %vm163_vm0, %v148_v2  ;;  %v248_v3 = vld [vmem:[%s5355_s12 + $0x30] sm:$0x3]  ;;  %v247_v5 = vld [vmem:[%s5355_s12 + $0x28] sm:$0xff]  ;;  %v246_v8 = vld [vmem:[%s5355_s12 + $0x20] sm:$0xff] }
  0x3e   :  { %3769 = vmatprep.subr.msk.mxu1 %vm163_vm0, %v248_v3  ;;  %3753 = vmatpush3.msk.msra.mxu0 %vm163_vm0, %v148_v2  ;;  %v145_v9 = vld [vmem:[%s5354_s2 + $0x18] sm:$0xff]  ;;  %v144_v11 = vld [vmem:[%s5354_s2 + $0x10] sm:$0xff]  ;;  %v143_v13 = vld [vmem:[%s5354_s2 + $0x8] sm:$0xff] }
  0x3f   :  { %3770 = vmatpush3.msk.msra.mxu1 %vm163_vm0, %v248_v3  ;;  %3754 = vmatprep.subr.mxu0 %v147_v4  ;;  %v245_v10 = vld [vmem:[%s5355_s12 + $0x18] sm:$0xff]  ;;  %v244_v12 = vld [vmem:[%s5355_s12 + $0x10] sm:$0xff]  ;;  %v243_v14 = vld [vmem:[%s5355_s12 + $0x8] sm:$0xff] }
  0x40   :  { %3771 = vmatprep.subr.mxu1 %v247_v5  ;;  %3755 = vmatpush3.msra.mxu0 %v147_v4  ;;  %v142_v15 = vld [vmem:[%s5354_s2] sm:$0xff]  ;;  %v340_v17 = vld [vmem:[%s5356_s1 + $0x30] sm:$0x3]  ;;  %v4613_v24 = vld [vmem:[%s5357_s4 + $0x18] sm:$0xff]  ;;  %s5362_s2 = sld [smem:[#allocation22_spill]] }
  0x41   :  { %134 = vperm.xlu0 %4198, %v127_v6   ;;  %3772 = vmatpush3.msra.mxu1 %v247_v5  ;;  %v242_v16 = vld [vmem:[%s5355_s12] sm:$0xff]  ;;  %v339_v26 = vld [vmem:[%s5356_s1 + $0x28] sm:$0xff]  ;;  %v4626_v27 = vld [vmem:[%s5357_s4 + $0x10] sm:$0xff]  ;;  %s5359_s12 = sld [smem:[#allocation19_spill]] }
  0x42   :  { %3756 = vmatprep.subr.mxu0 %v146_v7  ;;  %3773 = vmatprep.subr.mxu1 %v246_v8  ;;  %v338_v28 = vld [vmem:[%s5356_s1 + $0x20] sm:$0xff]  ;;  %v4636_v29 = vld [vmem:[%s5357_s4 + $0x8] sm:$0xff]  ;;  %v337_v30 = vld [vmem:[%s5356_s1 + $0x18] sm:$0xff] }
  0x43   :  { %3757 = vmatpush3.msra.mxu0 %v146_v7  ;;  %3774 = vmatpush3.msra.mxu1 %v246_v8  ;;  %v4646_v31 = vld [vmem:[%s5357_s4] sm:$0xff]  ;;  %v336_v32 = vld [vmem:[%s5356_s1 + $0x10] sm:$0xff]  ;;  %s5358_s4 = sld [smem:[#allocation18_spill]]  ;;  %v335_v34 = vld [vmem:[%s5356_s1 + $0x8] sm:$0xff] }
  0x44   :  { %3758 = vmatprep.subr.mxu0 %v145_v9  ;;  %3775 = vmatprep.subr.mxu1 %v245_v10  ;;  %v334_v36 = vld [vmem:[%s5356_s1] sm:$0xff] }
  0x45   :  { %3759 = vmatpush3.msra.mxu0 %v145_v9  ;;  %3776 = vmatpush3.msra.mxu1 %v245_v10  ;;  %v3457_v43 = vld [vmem:[%s5360_s11] ss:$0 sm:$0xff]  ;;  %v4775_v10 = vld [vmem:[#allocation7] ss:$0 sm:$0xff] }
  0x46   :  { %3760 = vmatprep.subr.mxu0 %v144_v11  ;;  %3777 = vmatprep.subr.mxu1 %v244_v12  ;;  %v3461_v44 = vld [vmem:[%s5361_s7] ss:$0 sm:$0xff]  ;;  %s4394_s7 = smov [#allocation8]  }
  0x47   :  { %3761 = vmatpush3.msra.mxu0 %v144_v11  ;;  %3778 = vmatpush3.msra.mxu1 %v244_v12  ;;  %v4693_v39 = vld [vmem:[%s5359_s12 + $0x18] sm:$0xff]  ;;  %v4703_v40 = vld [vmem:[%s5359_s12 + $0x10] sm:$0xff]  ;;  %v4711_v41 = vld [vmem:[%s5359_s12 + $0x8] sm:$0xff] }
  0x48   :  { %3762 = vmatprep.subr.mxu0 %v143_v13  ;;  %3779 = vmatprep.subr.mxu1 %v243_v14  ;;  %v4721_v42 = vld [vmem:[%s5359_s12] sm:$0xff] }
  0x49   :  { %3763 = vmatpush3.msra.mxu0 %v143_v13  ;;  %3780 = vmatpush3.msra.mxu1 %v243_v14  ;;  %v4659_v33 = vld [vmem:[%s5358_s4 + $0x18] sm:$0xff]  ;;  %v4669_v35 = vld [vmem:[%s5358_s4 + $0x10] sm:$0xff]  ;;  %v4679_v37 = vld [vmem:[%s5358_s4 + $0x8] sm:$0xff] }
  0x4a   :  { %3764 = vmatprep.subr.mxu0 %v142_v15  ;;  %3781 = vmatprep.subr.mxu1 %v242_v16  ;;  %v4686_v38 = vld [vmem:[%s5358_s4] sm:$0xff] }
  0x4b   :  { %3765 = vmatpush3.msra.mxu0 %v142_v15  ;;  %3782 = vmatpush3.msra.mxu1 %v242_v16  ;;  %v3465_v57 = vld [vmem:[%s5362_s2] ss:$0 sm:$0xff] }
  0x4c   :  { %3786 = vmatprep.subr.msk.mxu0 %vm163_vm0, %v340_v17  ;;  %3803 = vmatprep.subr.mxu1 %v4391_v18 }
  0xb7   :  { %v132_v21 = vpop.permute.xlu0 %131 }
  0xb8   :  { %vm136_vm2 = vcmp.eq.s32.totalorder %v132_v21, %v129_v20 }
  0xb9   :  { %v3455_v22 = vsel %vm136_vm2, 1.0, %v4391_v18 }
  0xba   :  { %3766 = vmatprep.mubr.msk.f32.mxu0 %vm156_vm1, %v3455_v22  ;;  %3783 = vmatprep.mubr.msk.f32.mxu1 %vm156_vm1, %v3455_v22 }
  0xbc   :  { %v135_v23 = vpop.permute.xlu0 %134 }
  0xbd   :  { %vm137_vm3 = vcmp.eq.s32.totalorder %v135_v23, %v129_v20 }
  0xbe   :  { %v3456_v25 = vsel %vm137_vm3, 1.0, %v4391_v18 }
  0xbf   :  { %3767 = vmatmul.mubr.msk.f32.vlgmr.msra.gmra.mxu0 %vm156_vm1, %v3456_v25  ;;  %3784 = vmatmul.mubr.msk.f32.vlgmr.msra.gmra.mxu1 %vm156_vm1, %v3456_v25 }
  0xc0   :  { %3787 = vmatpush3.msk.msra.mxu0 %vm163_vm0, %v340_v17  ;;  %3804 = vmatpush3.msra.mxu1 %v4613_v24 }
  0xc1   :  { %3788 = vmatprep.subr.mxu0 %v339_v26  ;;  %3800 = vmatprep.mubr.msk.f32.mxu0 %vm156_vm1, %v3455_v22 }
  0xc2   :  { %3805 = vmatprep.subr.mxu1 %v4391_v18  ;;  %3789 = vmatpush3.msra.mxu0 %v339_v26 }
  0xc3   :  { %3806 = vmatpush3.msra.mxu1 %v4626_v27  ;;  %3790 = vmatprep.subr.mxu0 %v338_v28 }
  0xc4   :  { %3807 = vmatprep.subr.mxu1 %v4391_v18  ;;  %3791 = vmatpush3.msra.mxu0 %v338_v28 }
  0xc5   :  { %3808 = vmatpush3.msra.mxu1 %v4636_v29  ;;  %3792 = vmatprep.subr.mxu0 %v337_v30 }
  0xc6   :  { %3809 = vmatprep.subr.mxu1 %v4391_v18  ;;  %3793 = vmatpush3.msra.mxu0 %v337_v30 }
  0xc7   :  { %3810 = vmatpush3.msra.mxu1 %v4646_v31  ;;  %3811 = vmatprep.mubr.msk.f32.mxu1 %vm4392_vm4, %v4391_v18 }
  0xc8   :  { %3794 = vmatprep.subr.mxu0 %v336_v32  ;;  %3812 = vmatmul.mubr.f32.vlgmr.msra.gmra.mxu1 %v4391_v18 }
  0xc9   :  { %3814 = vmatprep.subr.mxu1 %v4391_v18  ;;  %3795 = vmatpush3.msra.mxu0 %v336_v32 }
  0xca   :  { %3815 = vmatpush3.msra.mxu1 %v4659_v33  ;;  %3796 = vmatprep.subr.mxu0 %v335_v34 }
  0xcb   :  { %3816 = vmatprep.subr.mxu1 %v4391_v18  ;;  %3797 = vmatpush3.msra.mxu0 %v335_v34 }
  0xcc   :  { %3817 = vmatpush3.msra.mxu1 %v4669_v35  ;;  %3798 = vmatprep.subr.mxu0 %v334_v36 }
  0xcd   :  { %3818 = vmatprep.subr.mxu1 %v4391_v18  ;;  %3799 = vmatpush3.msra.mxu0 %v334_v36 }
  0xce   :  { %3819 = vmatpush3.msra.mxu1 %v4679_v37  ;;  %3801 = vmatmul.mubr.msk.f32.vlgmr.msra.gmra.mxu0 %vm156_vm1, %v3456_v25 }
  0xcf   :  { %3820 = vmatprep.subr.mxu1 %v4391_v18  ;;  %3822 = vmatprep.mubr.msk.f32.mxu1 %vm4392_vm4, %v4391_v18 }
  0xd0   :  { %3821 = vmatpush3.msra.mxu1 %v4686_v38  ;;  %3825 = vmatprep.subr.mxu0 %v4391_v18 }
  0xd1   :  { %3823 = vmatmul.mubr.f32.vlgmr.msra.gmra.mxu1 %v4391_v18  ;;  %3826 = vmatpush3.msra.mxu0 %v4693_v39 }
  0xd2   :  { %3827 = vmatprep.subr.mxu0 %v4391_v18  ;;  %3833 = vmatprep.mubr.msk.f32.mxu0 %vm4392_vm4, %v4391_v18 }
  0xd3   :  { %3828 = vmatpush3.msra.mxu0 %v4703_v40  ;;  %3836 = vmatprep.subr.mxu1 %v4391_v18 }
  0xd4   :  { %3829 = vmatprep.subr.mxu0 %v4391_v18  ;;  %3837 = vmatpush3.msra.mxu1 %v4613_v24 }
  0xd5   :  { %3830 = vmatpush3.msra.mxu0 %v4711_v41  ;;  %3838 = vmatprep.subr.mxu1 %v4391_v18 }
  0xd6   :  { %3831 = vmatprep.subr.mxu0 %v4391_v18  ;;  %3839 = vmatpush3.msra.mxu1 %v4626_v27 }
  0xd7   :  { %3832 = vmatpush3.msra.mxu0 %v4721_v42  ;;  %3840 = vmatprep.subr.mxu1 %v4391_v18 }
  0xd8   :  { %3834 = vmatmul.mubr.f32.vlgmr.msra.gmra.mxu0 %v4391_v18  ;;  %3847 = vmatprep.subr.mxu0 %v4391_v18 }
  0xd9   :  { %3848 = vmatpush3.msra.mxu0 %v4659_v33  ;;  %3841 = vmatpush3.msra.mxu1 %v4636_v29 }
  0xda   :  { %3849 = vmatprep.subr.mxu0 %v4391_v18  ;;  %3842 = vmatprep.subr.mxu1 %v4391_v18 }
  0xdb   :  { %3850 = vmatpush3.msra.mxu0 %v4669_v35  ;;  %3843 = vmatpush3.msra.mxu1 %v4646_v31 }
  0xdc   :  { %3851 = vmatprep.subr.mxu0 %v4391_v18  ;;  %3844 = vmatprep.mubr.msk.f32.mxu1 %vm4392_vm4, %v4391_v18 }
  0xdd   :  { %3852 = vmatpush3.msra.mxu0 %v4679_v37  ;;  %3855 = vmatprep.mubr.msk.f32.mxu0 %vm4392_vm4, %v4391_v18 }
  0xde   :  { %3853 = vmatprep.subr.mxu0 %v4391_v18  ;;  %3858 = vmatprep.subr.mxu1 %v4391_v18 }
  0xdf   :  { %3854 = vmatpush3.msra.mxu0 %v4686_v38 }
  0xe0   :  { %3869 = vmatprep.subr.mxu0 %v4391_v18 }
 0x17f   :  { %v3768_v45 = vpop.f32.mrf.mxu0  ;;  %v3785_v46 = vpop.f32.mrf.mxu1 }
 0x180   :  { %v4754_v47 = vadd.f32 %v3768_v45, %v3457_v43  ;;  %v4756_v48 = vadd.f32 %v3785_v46, %v3461_v44 }
 0x181   :  { %v233_v49 = vpop.f32.mrf.mxu0  ;;  %v325_v50 = vpop.f32.mrf.mxu1 }
 0x182   :  { %v4760_v53 = vadd.f32 %v3457_v43, %v233_v49  ;;  %v4771_v63 = vadd.f32 %v3461_v44, %v325_v50 }
 0x188   :  { %v517_v52 = vpop.f32.mrf.mxu1 }
 0x189   :  { %v518_v54 = vadd.f32 %v4758_v51, %v517_v52 }
 0x18a   :  { %v3813_v55 = vpop.f32.mrf.mxu1 }
 0x18b   :  { %v673_v56 = vadd.f32 %v518_v54, %v4760_v53 }
 0x18d   :  { %v3472_v58 = vmul.f32 -1.442695, %v673_v56 }
 0x18e   :  { %v3802_v59 = vpop.f32.mrf.mxu0 }
 0x18f   :  { %4221 = vpow2.f32 %v3472_v58  ;;  %v4767_v60 = vadd.f32 %v3802_v59, %v3465_v57 }
 0x190   :  { %v417_v3 = vpop.f32.mrf.mxu0 }
 0x191   :  { %v593_v62 = vpop.f32.mrf.mxu1  ;;  %v4778_v14 = vadd.f32 %v3465_v57, %v417_v3 }
 0x192   :  { %v594_v0 = vadd.f32 %v4769_v61, %v593_v62 }
 0x193   :  { %v3824_v1 = vpop.f32.mrf.mxu1 }
 0x194   :  { %v680_v2 = vadd.f32 %v594_v0, %v4771_v63 }
 0x196   :  { %v3473_v4 = vmul.f32 -1.442695, %v680_v2 }
 0x198   :  { %v669_v5 = vpop.f32.mrf.mxu0  ;;  %4223 = vpow2.f32 %v3473_v4 }
 0x199   :  { %v670_v12 = vadd.f32 %v4775_v10, %v669_v5 }
 0x19a   :  { %v3835_v6 = vpop.f32.mrf.mxu0 }
 0x19c   :  { %v4222_v7 = vpop.eup %4221 }
 0x19d   :  { %v677_v8 = vadd.f32 1.0, %v4222_v7 }
 0x19f   :  { %4225 = vrcp.f32 %v677_v8 }
 0x1a5   :  { %v4224_v9 = vpop.eup %4223 }
 0x1a6   :  { %v684_v11 = vadd.f32 1.0, %v4224_v9 }
 0x1a8   :  { %4227 = vrcp.f32 %v684_v11 }
 0x1ac   :  { %v4226_v13 = vpop.eup %4225 }
 0x1ad   :  { %v687_v15 = vmul.f32 %v4226_v13, %v670_v12 }
 0x1af   :  { %v688_v16 = vadd.f32 %v687_v15, %v4778_v14 }
 0x1b1   :  { %4229 = vtanh.f32 %v688_v16 }
 0x1b5   :  { %v4228_v17 = vpop.eup %4227 }
 0x1b6   :  { %v690_v20 = vsub.f32 1.0, %v4228_v17  ;;  %v692_v23 = vmul.f32 0.0, %v4228_v17 }
 0x1be   :  { %v4230_v21 = vpop.eup %4229 }
 0x1bf   :  { %v691_v22 = vmul.f32 %v4230_v21, %v690_v20 }
 0x1c1   :  { %v4781_v25 = vadd.f32 %v692_v23, %v691_v22 }
 0x1c3   :  { %3845 = vmatmul.mubr.msk.f32.vlgmr.msra.gmra.mxu1 %vm447_vm5, %v4781_v25  ;;  %3856 = vmatmul.mubr.msk.f32.vlgmr.msra.gmra.mxu0 %vm447_vm5, %v4781_v25  ;;  %v935_v5 = vrot.slane %v4781_v25, 6 }
 0x1c4   :  { %3859 = vmatpush3.msra.mxu1 %v4693_v39  ;;  %3866 = vmatprep.mubr.msk.f32.mxu1 %vm4392_vm4, %v4391_v18 }
 0x1c5   :  { %3860 = vmatprep.subr.mxu1 %v4391_v18  ;;  %3870 = vmatpush3.msra.mxu0 %v4613_v24 }
 0x1c6   :  { %3861 = vmatpush3.msra.mxu1 %v4703_v40  ;;  %3871 = vmatprep.subr.mxu0 %v4391_v18 }
 0x1c7   :  { %3862 = vmatprep.subr.mxu1 %v4391_v18  ;;  %3872 = vmatpush3.msra.mxu0 %v4626_v27 }
 0x1c8   :  { %3863 = vmatpush3.msra.mxu1 %v4711_v41  ;;  %3873 = vmatprep.subr.mxu0 %v4391_v18 }
 0x1c9   :  { %3864 = vmatprep.subr.mxu1 %v4391_v18  ;;  %3874 = vmatpush3.msra.mxu0 %v4636_v29 }
 0x1ca   :  { %3865 = vmatpush3.msra.mxu1 %v4721_v42  ;;  %3875 = vmatprep.subr.mxu0 %v4391_v18 }
 0x1cb   :  { %3867 = vmatmul.mubr.msk.f32.vlgmr.msra.gmra.mxu1 %vm447_vm5, %v4781_v25  ;;  %3880 = vmatprep.subr.mxu1 %v4391_v18 }
 0x1cc   :  { %3881 = vmatpush3.msra.mxu1 %v4659_v33  ;;  %3876 = vmatpush3.msra.mxu0 %v4646_v31 }
 0x1cd   :  { %3882 = vmatprep.subr.mxu1 %v4391_v18  ;;  %3877 = vmatprep.mubr.msk.f32.mxu0 %vm4392_vm4, %v4391_v18 }
 0x1ce   :  { %3883 = vmatpush3.msra.mxu1 %v4669_v35  ;;  %3888 = vmatprep.mubr.msk.f32.mxu1 %vm4392_vm4, %v4391_v18 }
 0x1cf   :  { %3884 = vmatprep.subr.mxu1 %v4391_v18  ;;  %3891 = vmatprep.subr.mxu0 %v4391_v18 }
 0x1d0   :  { %3885 = vmatpush3.msra.mxu1 %v4679_v37 }
 0x1d1   :  { %3886 = vmatprep.subr.mxu1 %v4391_v18 }
 0x1d2   :  { %3887 = vmatpush3.msra.mxu1 %v4686_v38 }
 0x1d3   :  { %3902 = vmatprep.subr.mxu1 %v4391_v18 }
 0x283   :  { %v763_v26 = vpop.f32.mrf.mxu1  ;;  %v833_v28 = vpop.f32.mrf.mxu0 }
 0x284   :  { %v764_v30 = vadd.f32 %v4758_v51, %v763_v26  ;;  %v834_v43 = vadd.f32 %v4769_v61, %v833_v28 }
 0x285   :  { %v3846_v32 = vpop.f32.mrf.mxu1  ;;  %v3857_v34 = vpop.f32.mrf.mxu0 }
 0x286   :  { %v908_v36 = vrot.slane %v764_v30, 6  ;;  %v918_v46 = vrot.slane %v834_v43, 6 }
 0x288   :  { %v910_v44 = vadd.f32 %v908_v36, %v4760_v53  ;;  %v920_v52 = vadd.f32 %v918_v46, %v4771_v63 }
 0x28a   :  { %v3477_v45 = vmul.f32 -1.442695, %v910_v44  ;;  %v3478_v54 = vmul.f32 -1.442695, %v920_v52 }
 0x28b   :  { %v903_v49 = vpop.f32.mrf.mxu1 }
 0x28c   :  { %4231 = vpow2.f32 %v3477_v45  ;;  %v904_v58 = vadd.f32 %v4775_v10, %v903_v49 }
 0x28d   :  { %v3868_v50 = vpop.f32.mrf.mxu1  ;;  %4233 = vpow2.f32 %v3478_v54 }
 0x28e   :  { %v928_v62 = vrot.slane %v904_v58, 6 }
 0x299   :  { %v4232_v55 = vpop.eup %4231 }
 0x29a   :  { %v914_v56 = vadd.f32 1.0, %v4232_v55  ;;  %v4234_v57 = vpop.eup %4233 }
 0x29b   :  { %v924_v59 = vadd.f32 1.0, %v4234_v57 }
 0x29c   :  { %4235 = vrcp.f32 %v914_v56 }
 0x29d   :  { %4237 = vrcp.f32 %v924_v59 }
 0x2a9   :  { %v4236_v0 = vpop.eup %4235 }
 0x2aa   :  { %v930_v1 = vmul.f32 %v4236_v0, %v928_v62  ;;  %v4238_v3 = vpop.eup %4237 }
 0x2ab   :  { %v933_v4 = vsub.f32 1.0, %v4238_v3  ;;  %v937_v8 = vmul.f32 %v4238_v3, %v935_v5 }
 0x2ac   :  { %v931_v2 = vadd.f32 %v930_v1, %v4778_v14 }
 0x2ae   :  { %4239 = vtanh.f32 %v931_v2 }
 0x2bb   :  { %v4240_v6 = vpop.eup %4239 }
 0x2bc   :  { %v934_v7 = vmul.f32 %v4240_v6, %v933_v4 }
 0x2be   :  { %v4826_v9 = vadd.f32 %v937_v8, %v934_v7 }
 0x2c0   :  { %v940_v11 = vrot.slane %v4826_v9, 2  ;;  %v1181_v55 = vrot.slane %v4826_v9, 6 }
 0x2c2   :  { %3878 = vmatmul.mubr.msk.f32.vlgmr.msra.gmra.mxu0 %vm447_vm5, %v940_v11  ;;  %3889 = vmatmul.mubr.msk.f32.vlgmr.msra.gmra.mxu1 %vm447_vm5, %v940_v11 }
 0x2c3   :  { %3892 = vmatpush3.msra.mxu0 %v4693_v39  ;;  %3899 = vmatprep.mubr.msk.f32.mxu0 %vm4392_vm4, %v4391_v18 }
 0x2c4   :  { %3893 = vmatprep.subr.mxu0 %v4391_v18  ;;  %3903 = vmatpush3.msra.mxu1 %v4613_v24 }
 0x2c5   :  { %3894 = vmatpush3.msra.mxu0 %v4703_v40  ;;  %3904 = vmatprep.subr.mxu1 %v4391_v18 }
 0x2c6   :  { %3895 = vmatprep.subr.mxu0 %v4391_v18  ;;  %3905 = vmatpush3.msra.mxu1 %v4626_v27 }
 0x2c7   :  { %3896 = vmatpush3.msra.mxu0 %v4711_v41  ;;  %3906 = vmatprep.subr.mxu1 %v4391_v18 }
 0x2c8   :  { %3897 = vmatprep.subr.mxu0 %v4391_v18  ;;  %3907 = vmatpush3.msra.mxu1 %v4636_v29 }
 0x2c9   :  { %3898 = vmatpush3.msra.mxu0 %v4721_v42  ;;  %3908 = vmatprep.subr.mxu1 %v4391_v18 }
 0x2ca   :  { %3900 = vmatmul.mubr.msk.f32.vlgmr.msra.gmra.mxu0 %vm447_vm5, %v940_v11  ;;  %3913 = vmatprep.subr.mxu0 %v4391_v18 }
 0x2cb   :  { %3914 = vmatpush3.msra.mxu0 %v4659_v33  ;;  %3909 = vmatpush3.msra.mxu1 %v4646_v31 }
 0x2cc   :  { %3915 = vmatprep.subr.mxu0 %v4391_v18  ;;  %3910 = vmatprep.mubr.msk.f32.mxu1 %vm4392_vm4, %v4391_v18 }
 0x2cd   :  { %3916 = vmatpush3.msra.mxu0 %v4669_v35  ;;  %3921 = vmatprep.mubr.msk.f32.mxu0 %vm4392_vm4, %v4391_v18 }
 0x2ce   :  { %3917 = vmatprep.subr.mxu0 %v4391_v18  ;;  %3924 = vmatprep.subr.mxu1 %v4391_v18 }
 0x2cf   :  { %3918 = vmatpush3.msra.mxu0 %v4679_v37 }
 0x2d0   :  { %3919 = vmatprep.subr.mxu0 %v4391_v18 }
 0x2d1   :  { %3920 = vmatpush3.msra.mxu0 %v4686_v38 }
 0x2d2   :  { %3935 = vmatprep.subr.mxu0 %v4391_v18 }
 0x382   :  { %v1009_v12 = vpop.f32.mrf.mxu0  ;;  %v1079_v13 = vpop.f32.mrf.mxu1 }
 0x383   :  { %v1010_v15 = vadd.f32 %v4758_v51, %v1009_v12  ;;  %v1080_v21 = vadd.f32 %v4769_v61, %v1079_v13 }
 0x384   :  { %v3879_v16 = vpop.f32.mrf.mxu0  ;;  %v3890_v17 = vpop.f32.mrf.mxu1 }
 0x385   :  { %v1154_v20 = vrot.slane %v1010_v15, 4  ;;  %v1164_v25 = vrot.slane %v1080_v21, 4 }
 0x387   :  { %v1156_v22 = vadd.f32 %v1154_v20, %v4760_v53  ;;  %v1166_v30 = vadd.f32 %v1164_v25, %v4771_v63 }
 0x389   :  { %v3482_v23 = vmul.f32 -1.442695, %v1156_v22  ;;  %v3483_v32 = vmul.f32 -1.442695, %v1166_v30 }
 0x38a   :  { %v1149_v26 = vpop.f32.mrf.mxu0 }
 0x38b   :  { %4241 = vpow2.f32 %v3482_v23  ;;  %v1150_v44 = vadd.f32 %v4775_v10, %v1149_v26 }
 0x38c   :  { %v3901_v28 = vpop.f32.mrf.mxu0  ;;  %4243 = vpow2.f32 %v3483_v32 }
 0x38d   :  { %v1174_v46 = vrot.slane %v1150_v44, 4 }
 0x398   :  { %v4242_v34 = vpop.eup %4241 }
 0x399   :  { %v1160_v36 = vadd.f32 1.0, %v4242_v34  ;;  %v4244_v43 = vpop.eup %4243 }
 0x39a   :  { %v1170_v45 = vadd.f32 1.0, %v4244_v43 }
 0x39b   :  { %4245 = vrcp.f32 %v1160_v36 }
 0x39c   :  { %4247 = vrcp.f32 %v1170_v45 }
 0x3a8   :  { %v4246_v49 = vpop.eup %4245 }
 0x3a9   :  { %v1176_v50 = vmul.f32 %v4246_v49, %v1174_v46  ;;  %v4248_v54 = vpop.eup %4247 }
 0x3aa   :  { %v1179_v56 = vsub.f32 1.0, %v4248_v54  ;;  %v1183_v59 = vmul.f32 %v4248_v54, %v1181_v55 }
 0x3ab   :  { %v1177_v52 = vadd.f32 %v1176_v50, %v4778_v14 }
 0x3ad   :  { %4249 = vtanh.f32 %v1177_v52 }
 0x3ba   :  { %v4250_v57 = vpop.eup %4249 }
 0x3bb   :  { %v1180_v58 = vmul.f32 %v4250_v57, %v1179_v56 }
 0x3bd   :  { %v4869_v62 = vadd.f32 %v1183_v59, %v1180_v58 }
 0x3bf   :  { %v1186_v0 = vrot.slane %v4869_v62, 4  ;;  %v1427_v32 = vrot.slane %v4869_v62, 6 }
 0x3c1   :  { %3911 = vmatmul.mubr.msk.f32.vlgmr.msra.gmra.mxu1 %vm447_vm5, %v1186_v0  ;;  %3922 = vmatmul.mubr.msk.f32.vlgmr.msra.gmra.mxu0 %vm447_vm5, %v1186_v0 }
 0x3c2   :  { %3925 = vmatpush3.msra.mxu1 %v4693_v39  ;;  %3932 = vmatprep.mubr.msk.f32.mxu1 %vm4392_vm4, %v4391_v18 }
 0x3c3   :  { %3926 = vmatprep.subr.mxu1 %v4391_v18  ;;  %3936 = vmatpush3.msra.mxu0 %v4613_v24 }
 0x3c4   :  { %3927 = vmatpush3.msra.mxu1 %v4703_v40  ;;  %3937 = vmatprep.subr.mxu0 %v4391_v18 }
 0x3c5   :  { %3928 = vmatprep.subr.mxu1 %v4391_v18  ;;  %3938 = vmatpush3.msra.mxu0 %v4626_v27 }
 0x3c6   :  { %3929 = vmatpush3.msra.mxu1 %v4711_v41  ;;  %3939 = vmatprep.subr.mxu0 %v4391_v18 }
 0x3c7   :  { %3930 = vmatprep.subr.mxu1 %v4391_v18  ;;  %3940 = vmatpush3.msra.mxu0 %v4636_v29 }
 0x3c8   :  { %3931 = vmatpush3.msra.mxu1 %v4721_v42  ;;  %3941 = vmatprep.subr.mxu0 %v4391_v18 }
 0x3c9   :  { %3933 = vmatmul.mubr.msk.f32.vlgmr.msra.gmra.mxu1 %vm447_vm5, %v1186_v0  ;;  %3946 = vmatprep.subr.mxu1 %v4391_v18 }
 0x3ca   :  { %3947 = vmatpush3.msra.mxu1 %v4659_v33  ;;  %3942 = vmatpush3.msra.mxu0 %v4646_v31 }
 0x3cb   :  { %3948 = vmatprep.subr.mxu1 %v4391_v18  ;;  %3943 = vmatprep.mubr.msk.f32.mxu0 %vm4392_vm4, %v4391_v18 }
 0x3cc   :  { %3949 = vmatpush3.msra.mxu1 %v4669_v35  ;;  %3954 = vmatprep.mubr.msk.f32.mxu1 %vm4392_vm4, %v4391_v18 }
 0x3cd   :  { %3950 = vmatprep.subr.mxu1 %v4391_v18  ;;  %3957 = vmatprep.subr.mxu0 %v4391_v18 }
 0x3ce   :  { %3951 = vmatpush3.msra.mxu1 %v4679_v37 }
 0x3cf   :  { %3952 = vmatprep.subr.mxu1 %v4391_v18 }
 0x3d0   :  { %3953 = vmatpush3.msra.mxu1 %v4686_v38 }
 0x3d1   :  { %3968 = vmatprep.subr.mxu1 %v4391_v18 }
 0x481   :  { %v1255_v1 = vpop.f32.mrf.mxu1  ;;  %v1325_v2 = vpop.f32.mrf.mxu0 }
 0x482   :  { %v1256_v3 = vadd.f32 %v4758_v51, %v1255_v1  ;;  %v1326_v7 = vadd.f32 %v4769_v61, %v1325_v2 }
 0x483   :  { %v3912_v4 = vpop.f32.mrf.mxu1  ;;  %v3923_v5 = vpop.f32.mrf.mxu0 }
 0x484   :  { %v1400_v6 = vrot.slane %v1256_v3, 2  ;;  %v1410_v11 = vrot.slane %v1326_v7, 2 }
 0x486   :  { %v1402_v8 = vadd.f32 %v1400_v6, %v4760_v53  ;;  %v1412_v15 = vadd.f32 %v1410_v11, %v4771_v63 }
 0x488   :  { %v3487_v9 = vmul.f32 -1.442695, %v1402_v8  ;;  %v3488_v16 = vmul.f32 -1.442695, %v1412_v15 }
 0x489   :  { %v1395_v12 = vpop.f32.mrf.mxu1 }
 0x48a   :  { %4251 = vpow2.f32 %v3487_v9  ;;  %v1396_v22 = vadd.f32 %v4775_v10, %v1395_v12 }
 0x48b   :  { %v3934_v13 = vpop.f32.mrf.mxu1  ;;  %4253 = vpow2.f32 %v3488_v16 }
 0x48c   :  { %v1420_v25 = vrot.slane %v1396_v22, 2 }
 0x497   :  { %v4252_v17 = vpop.eup %4251 }
 0x498   :  { %v1406_v20 = vadd.f32 1.0, %v4252_v17  ;;  %v4254_v21 = vpop.eup %4253 }
 0x499   :  { %v1416_v23 = vadd.f32 1.0, %v4254_v21 }
 0x49a   :  { %4255 = vrcp.f32 %v1406_v20 }
 0x49b   :  { %4257 = vrcp.f32 %v1416_v23 }
 0x4a7   :  { %v4256_v26 = vpop.eup %4255 }
 0x4a8   :  { %v1422_v53 = vmul.f32 %v4256_v26, %v1420_v25  ;;  %v4258_v30 = vpop.eup %4257 }
 0x4a9   :  { %v1425_v63 = vsub.f32 1.0, %v4258_v30  ;;  %v1429_v43 = vmul.f32 %v4258_v30, %v1427_v32 }
 0x4aa   :  { %v1423_v28 = vadd.f32 %v1422_v53, %v4778_v14 }
 0x4ac   :  { %4259 = vtanh.f32 %v1423_v28 }
 0x4b9   :  { %v4260_v34 = vpop.eup %4259 }
 0x4ba   :  { %v1426_v36 = vmul.f32 %v4260_v34, %v1425_v63 }
 0x4bc   :  { %v1430_v44 = vadd.f32 %v1429_v43, %v1426_v36 }
 0x4be   :  { %v1432_v45 = vrot.slane %v1430_v44, 6 }
 0x4c0   :  { %3944 = vmatmul.mubr.msk.f32.vlgmr.msra.gmra.mxu0 %vm447_vm5, %v1432_v45  ;;  %3955 = vmatmul.mubr.msk.f32.vlgmr.msra.gmra.mxu1 %vm447_vm5, %v1432_v45 }
 0x4c1   :  { %3958 = vmatpush3.msra.mxu0 %v4693_v39  ;;  %3965 = vmatprep.mubr.msk.f32.mxu0 %vm4392_vm4, %v4391_v18 }
 0x4c2   :  { %3959 = vmatprep.subr.mxu0 %v4391_v18  ;;  %3969 = vmatpush3.msra.mxu1 %v4613_v24 }
 0x4c3   :  { %3960 = vmatpush3.msra.mxu0 %v4703_v40  ;;  %3970 = vmatprep.subr.mxu1 %v4391_v18 }
 0x4c4   :  { %3961 = vmatprep.subr.mxu0 %v4391_v18  ;;  %3971 = vmatpush3.msra.mxu1 %v4626_v27 }
 0x4c5   :  { %3962 = vmatpush3.msra.mxu0 %v4711_v41  ;;  %3972 = vmatprep.subr.mxu1 %v4391_v18 }
 0x4c6   :  { %3963 = vmatprep.subr.mxu0 %v4391_v18  ;;  %3973 = vmatpush3.msra.mxu1 %v4636_v29 }
 0x4c7   :  { %3964 = vmatpush3.msra.mxu0 %v4721_v42  ;;  %3974 = vmatprep.subr.mxu1 %v4391_v18 }
 0x4c8   :  { %3966 = vmatmul.mubr.msk.f32.vlgmr.msra.gmra.mxu0 %vm447_vm5, %v1432_v45  ;;  %3979 = vmatprep.subr.mxu0 %v4391_v18 }
 0x4c9   :  { %3980 = vmatpush3.msra.mxu0 %v4659_v33  ;;  %3975 = vmatpush3.msra.mxu1 %v4646_v31 }
 0x4ca   :  { %3981 = vmatprep.subr.mxu0 %v4391_v18  ;;  %3976 = vmatprep.mubr.msk.f32.mxu1 %vm4392_vm4, %v4391_v18 }
 0x4cb   :  { %3982 = vmatpush3.msra.mxu0 %v4669_v35  ;;  %3987 = vmatprep.mubr.msk.f32.mxu0 %vm4392_vm4, %v4391_v18 }
 0x4cc   :  { %3983 = vmatprep.subr.mxu0 %v4391_v18  ;;  %3990 = vmatprep.subr.mxu1 %v4391_v18 }
 0x4cd   :  { %3984 = vmatpush3.msra.mxu0 %v4679_v37 }
 0x4ce   :  { %3985 = vmatprep.subr.mxu0 %v4391_v18 }
 0x4cf   :  { %3986 = vmatpush3.msra.mxu0 %v4686_v38 }
 0x4d0   :  { %4001 = vmatprep.subr.mxu0 %v4391_v18 }
 0x580   :  { %v1501_v14 = vpop.f32.mrf.mxu0  ;;  %v1571_v46 = vpop.f32.mrf.mxu1 }
 0x581   :  { %v1502_v49 = vadd.f32 %v4758_v51, %v1501_v14  ;;  %v1572_v56 = vadd.f32 %v4769_v61, %v1571_v46 }
 0x582   :  { %v3945_v50 = vpop.f32.mrf.mxu0  ;;  %v3956_v52 = vpop.f32.mrf.mxu1 }
 0x583   :  { %v1645_v54 = vadd.f32 %v1502_v49, %v4754_v47  ;;  %v1652_v58 = vadd.f32 %v1572_v56, %v4756_v48 }
 0x585   :  { %v3492_v55 = vmul.f32 -1.442695, %v1645_v54  ;;  %v3493_v62 = vmul.f32 -1.442695, %v1652_v58 }
 0x587   :  { %4261 = vpow2.f32 %v3492_v55 }
 0x588   :  { %v1641_v57 = vpop.f32.mrf.mxu0  ;;  %4263 = vpow2.f32 %v3493_v62 }
 0x589   :  { %v1642_v4 = vadd.f32 %v4775_v10, %v1641_v57 }
 0x58a   :  { %v3967_v59 = vpop.f32.mrf.mxu0 }
 0x594   :  { %v4262_v0 = vpop.eup %4261 }
 0x595   :  { %v1649_v1 = vadd.f32 1.0, %v4262_v0  ;;  %v4264_v2 = vpop.eup %4263 }
 0x596   :  { %v1656_v3 = vadd.f32 1.0, %v4264_v2 }
 0x597   :  { %4265 = vrcp.f32 %v1649_v1 }
 0x598   :  { %4267 = vrcp.f32 %v1656_v3 }
 0x5a4   :  { %v4266_v5 = vpop.eup %4265 }
 0x5a5   :  { %v1659_v6 = vmul.f32 %v4266_v5, %v1642_v4  ;;  %v4268_v8 = vpop.eup %4267 }
 0x5a6   :  { %v1662_v9 = vsub.f32 1.0, %v4268_v8  ;;  %v1665_v13 = vmul.f32 %v4268_v8, %v1432_v45 }
 0x5a7   :  { %v1660_v7 = vadd.f32 %v1659_v6, %v4767_v60 }
 0x5a9   :  { %4269 = vtanh.f32 %v1660_v7 }
 0x5b6   :  { %v4270_v11 = vpop.eup %4269 }
 0x5b7   :  { %v1663_v12 = vmul.f32 %v4270_v11, %v1662_v9 }
 0x5b9   :  { %v4951_v15 = vadd.f32 %v1665_v13, %v1663_v12 }
 0x5bb   :  { %3977 = vmatmul.mubr.msk.f32.vlgmr.msra.gmra.mxu1 %vm447_vm5, %v4951_v15  ;;  %3988 = vmatmul.mubr.msk.f32.vlgmr.msra.gmra.mxu0 %vm447_vm5, %v4951_v15  ;;  %v1908_v56 = vrot.slane %v4951_v15, 6 }
 0x5bc   :  { %3991 = vmatpush3.msra.mxu1 %v4693_v39  ;;  %3998 = vmatprep.mubr.msk.f32.mxu1 %vm4392_vm4, %v4391_v18 }
 0x5bd   :  { %3992 = vmatprep.subr.mxu1 %v4391_v18  ;;  %4002 = vmatpush3.msra.mxu0 %v4613_v24 }
 0x5be   :  { %3993 = vmatpush3.msra.mxu1 %v4703_v40  ;;  %4003 = vmatprep.subr.mxu0 %v4391_v18 }
 0x5bf   :  { %3994 = vmatprep.subr.mxu1 %v4391_v18  ;;  %4004 = vmatpush3.msra.mxu0 %v4626_v27 }
 0x5c0   :  { %3995 = vmatpush3.msra.mxu1 %v4711_v41  ;;  %4005 = vmatprep.subr.mxu0 %v4391_v18 }
 0x5c1   :  { %3996 = vmatprep.subr.mxu1 %v4391_v18  ;;  %4006 = vmatpush3.msra.mxu0 %v4636_v29 }
 0x5c2   :  { %3997 = vmatpush3.msra.mxu1 %v4721_v42  ;;  %4007 = vmatprep.subr.mxu0 %v4391_v18 }
 0x5c3   :  { %3999 = vmatmul.mubr.msk.f32.vlgmr.msra.gmra.mxu1 %vm447_vm5, %v4951_v15  ;;  %4012 = vmatprep.subr.mxu1 %v4391_v18 }
 0x5c4   :  { %4013 = vmatpush3.msra.mxu1 %v4659_v33  ;;  %4008 = vmatpush3.msra.mxu0 %v4646_v31 }
 0x5c5   :  { %4014 = vmatprep.subr.mxu1 %v4391_v18  ;;  %4009 = vmatprep.mubr.msk.f32.mxu0 %vm4392_vm4, %v4391_v18 }
 0x5c6   :  { %4015 = vmatpush3.msra.mxu1 %v4669_v35  ;;  %4020 = vmatprep.mubr.msk.f32.mxu1 %vm4392_vm4, %v4391_v18 }
 0x5c7   :  { %4016 = vmatprep.subr.mxu1 %v4391_v18  ;;  %4023 = vmatprep.subr.mxu0 %v4391_v18 }
 0x5c8   :  { %4017 = vmatpush3.msra.mxu1 %v4679_v37 }
 0x5c9   :  { %4018 = vmatprep.subr.mxu1 %v4391_v18 }
 0x5ca   :  { %4019 = vmatpush3.msra.mxu1 %v4686_v38 }
 0x5cb   :  { %4034 = vmatprep.subr.mxu1 %v4391_v18 }
 0x67b   :  { %v1736_v16 = vpop.f32.mrf.mxu1  ;;  %v1806_v17 = vpop.f32.mrf.mxu0 }
 0x67c   :  { %v1737_v20 = vadd.f32 %v4758_v51, %v1736_v16  ;;  %v1807_v25 = vadd.f32 %v4769_v61, %v1806_v17 }
 0x67d   :  { %v3978_v21 = vpop.f32.mrf.mxu1  ;;  %v3989_v22 = vpop.f32.mrf.mxu0 }
 0x67e   :  { %v1881_v23 = vrot.slane %v1737_v20, 6  ;;  %v1891_v28 = vrot.slane %v1807_v25, 6 }
 0x680   :  { %v1883_v26 = vadd.f32 %v1881_v23, %v4754_v47  ;;  %v1893_v63 = vadd.f32 %v1891_v28, %v4756_v48 }
 0x682   :  { %v3497_v53 = vmul.f32 -1.442695, %v1883_v26  ;;  %v3498_v34 = vmul.f32 -1.442695, %v1893_v63 }
 0x683   :  { %v1876_v30 = vpop.f32.mrf.mxu1 }
 0x684   :  { %4271 = vpow2.f32 %v3497_v53  ;;  %v1877_v45 = vadd.f32 %v4775_v10, %v1876_v30  ;;  %v2405_v30 = vld [vmem:[%s5363_s0] sm:$0xff] }
 0x685   :  { %v4000_v32 = vpop.f32.mrf.mxu1  ;;  %4273 = vpow2.f32 %v3498_v34  ;;  %v4204_v34 = vld [vmem:[%s5317_s16 + $0x8] sm:$0xff]  }
 0x686   :  { %v1901_v46 = vrot.slane %v1877_v45, 6  ;;  %v2406_v32 = vld [vmem:[%s5363_s0 + $0x8] sm:$0xff] }
 0x687   :  { %v2407_v63 = vpack.c.bf16 %v2406_v32, %v2405_v30 }
 0x691   :  { %v4272_v36 = vpop.eup %4271 }
 0x692   :  { %v1887_v43 = vadd.f32 1.0, %v4272_v36  ;;  %v4274_v44 = vpop.eup %4273  ;;  %v4206_v36 = vld [vmem:[%s5317_s16] sm:$0xff]  }
 0x693   :  { %v1897_v14 = vadd.f32 1.0, %v4274_v44 }
 0x694   :  { %4275 = vrcp.f32 %v1887_v43 }
 0x695   :  { %4277 = vrcp.f32 %v1897_v14 }
 0x6a1   :  { %v4276_v49 = vpop.eup %4275 }
 0x6a2   :  { %v1903_v50 = vmul.f32 %v4276_v49, %v1901_v46  ;;  %v4278_v54 = vpop.eup %4277 }
 0x6a3   :  { %v1906_v55 = vsub.f32 1.0, %v4278_v54  ;;  %v1910_v59 = vmul.f32 %v4278_v54, %v1908_v56 }
 0x6a4   :  { %v1904_v52 = vadd.f32 %v1903_v50, %v4767_v60 }
 0x6a6   :  { %4279 = vtanh.f32 %v1904_v52 }
 0x6b3   :  { %v4280_v57 = vpop.eup %4279 }
 0x6b4   :  { %v1907_v58 = vmul.f32 %v4280_v57, %v1906_v55 }
 0x6b6   :  { %v4996_v62 = vadd.f32 %v1910_v59, %v1907_v58 }
 0x6b8   :  { %v1913_v0 = vrot.slane %v4996_v62, 2  ;;  %v2154_v21 = vrot.slane %v4996_v62, 6 }
 0x6ba   :  { %4010 = vmatmul.mubr.msk.f32.vlgmr.msra.gmra.mxu0 %vm447_vm5, %v1913_v0  ;;  %4021 = vmatmul.mubr.msk.f32.vlgmr.msra.gmra.mxu1 %vm447_vm5, %v1913_v0 }
 0x6bb   :  { %4024 = vmatpush3.msra.mxu0 %v4693_v39  ;;  %4031 = vmatprep.mubr.msk.f32.mxu0 %vm4392_vm4, %v4391_v18 }
 0x6bc   :  { %4025 = vmatprep.subr.mxu0 %v4391_v18  ;;  %4035 = vmatpush3.msra.mxu1 %v4613_v24 }
 0x6bd   :  { %4026 = vmatpush3.msra.mxu0 %v4703_v40  ;;  %4036 = vmatprep.subr.mxu1 %v4391_v18 }
 0x6be   :  { %4027 = vmatprep.subr.mxu0 %v4391_v18  ;;  %4037 = vmatpush3.msra.mxu1 %v4626_v27 }
 0x6bf   :  { %4028 = vmatpush3.msra.mxu0 %v4711_v41  ;;  %4038 = vmatprep.subr.mxu1 %v4391_v18 }
 0x6c0   :  { %4029 = vmatprep.subr.mxu0 %v4391_v18  ;;  %4039 = vmatpush3.msra.mxu1 %v4636_v29 }
 0x6c1   :  { %4030 = vmatpush3.msra.mxu0 %v4721_v42  ;;  %4040 = vmatprep.subr.mxu1 %v4391_v18 }
 0x6c2   :  { %4032 = vmatmul.mubr.msk.f32.vlgmr.msra.gmra.mxu0 %vm447_vm5, %v1913_v0  ;;  %4045 = vmatprep.subr.mxu0 %v4391_v18 }
 0x6c3   :  { %4046 = vmatpush3.msra.mxu0 %v4659_v33  ;;  %4041 = vmatpush3.msra.mxu1 %v4646_v31 }
 0x6c4   :  { %4047 = vmatprep.subr.mxu0 %v4391_v18  ;;  %4042 = vmatprep.mubr.msk.f32.mxu1 %vm4392_vm4, %v4391_v18 }
 0x6c5   :  { %4048 = vmatpush3.msra.mxu0 %v4669_v35  ;;  %4053 = vmatprep.mubr.msk.f32.mxu0 %vm4392_vm4, %v4391_v18 }
 0x6c6   :  { %4049 = vmatprep.subr.mxu0 %v4391_v18  ;;  %4056 = vmatprep.subr.mxu1 %v4391_v18 }
 0x6c7   :  { %4050 = vmatpush3.msra.mxu0 %v4679_v37 }
 0x6c8   :  { %4051 = vmatprep.subr.mxu0 %v4391_v18 }
 0x6c9   :  { %4052 = vmatpush3.msra.mxu0 %v4686_v38 }
 0x6ca   :  { %4067 = vmatprep.subr.bf16.mxu0 %v4391_v18 }
 0x77a   :  { %v1982_v24 = vpop.f32.mrf.mxu0  ;;  %v2052_v27 = vpop.f32.mrf.mxu1 }
 0x77b   :  { %v1983_v29 = vadd.f32 %v4758_v51, %v1982_v24  ;;  %v2053_v1 = vadd.f32 %v4769_v61, %v2052_v27 }
 0x77c   :  { %v4011_v31 = vpop.f32.mrf.mxu0  ;;  %v4022_v33 = vpop.f32.mrf.mxu1 }
 0x77d   :  { %v2127_v35 = vrot.slane %v1983_v29, 4  ;;  %v2137_v4 = vrot.slane %v2053_v1, 4 }
 0x77f   :  { %v2129_v2 = vadd.f32 %v2127_v35, %v4754_v47  ;;  %v2139_v38 = vadd.f32 %v2137_v4, %v4756_v48 }
 0x781   :  { %v3502_v3 = vmul.f32 -1.442695, %v2129_v2  ;;  %v3503_v6 = vmul.f32 -1.442695, %v2139_v38 }
 0x782   :  { %v2122_v37 = vpop.f32.mrf.mxu0 }
 0x783   :  { %4281 = vpow2.f32 %v3502_v3  ;;  %v2123_v11 = vadd.f32 %v4775_v10, %v2122_v37 }
 0x784   :  { %v4033_v5 = vpop.f32.mrf.mxu0  ;;  %4283 = vpow2.f32 %v3503_v6 }
 0x785   :  { %v2147_v13 = vrot.slane %v2123_v11, 4 }
 0x790   :  { %v4282_v7 = vpop.eup %4281 }
 0x791   :  { %v2133_v8 = vadd.f32 1.0, %v4282_v7  ;;  %v4284_v9 = vpop.eup %4283 }
 0x792   :  { %v2143_v12 = vadd.f32 1.0, %v4284_v9 }
 0x793   :  { %4285 = vrcp.f32 %v2133_v8 }
 0x794   :  { %4287 = vrcp.f32 %v2143_v12  ;;  %v4207_v12 = vld [vmem:[%s5320_s19 + $0x18] sm:$0xff]  }
 0x7a0   :  { %v4286_v15 = vpop.eup %4285 }
 0x7a1   :  { %v2149_v16 = vmul.f32 %v4286_v15, %v2147_v13  ;;  %v4288_v20 = vpop.eup %4287  ;;  %v4208_v15 = vld [vmem:[%s5320_s19 + $0x10] sm:$0xff]  }
 0x7a2   :  { %v2152_v22 = vsub.f32 1.0, %v4288_v20  ;;  %v2156_v26 = vmul.f32 %v4288_v20, %v2154_v21  ;;  %v4210_v20 = vld [vmem:[%s5320_s19] sm:$0xff]   ;;  %v4393_v21 = vmov 1966171168  }
 0x7a3   :  { %v2150_v17 = vadd.f32 %v2149_v16, %v4767_v60 }
 0x7a5   :  { %4289 = vtanh.f32 %v2150_v17  ;;  %v4209_v17 = vld [vmem:[%s5320_s19 + $0x8] sm:$0xff]  }
 0x7b2   :  { %v4290_v23 = vpop.eup %4289 }
 0x7b3   :  { %v2153_v25 = vmul.f32 %v4290_v23, %v2152_v22  ;;  %v2531_v22 = vunpack.c.l.s4 %v4393_v21 }
 0x7b5   :  { %v5039_v53 = vadd.f32 %v2156_v26, %v2153_v25  ;;  %v2532_v23 = vunpack.c.0.s8 %v2531_v22  ;;  %v2534_v25 = vshrl.u32 %v128_v19, 7 }
 0x7b7   :  { %v2159_v28 = vrot.slane %v5039_v53, 4  ;;  %v2400_v35 = vrot.slane %v5039_v53, 6  ;;  %v5131_v26 = vsub.s32 %v2532_v23, %v2534_v25 }
 0x7b9   :  { %4043 = vmatmul.mubr.msk.f32.vlgmr.msra.gmra.mxu1 %vm447_vm5, %v2159_v28  ;;  %4054 = vmatmul.mubr.msk.f32.vlgmr.msra.gmra.mxu0 %vm447_vm5, %v2159_v28 }
 0x7ba   :  { %4057 = vmatpush3.msra.mxu1 %v4693_v39  ;;  %4064 = vmatprep.mubr.msk.f32.mxu1 %vm4392_vm4, %v4391_v18  ;;  %v4199_v39 = vld [vmem:[%s5315_s14 + $0x8] sm:$0xff]  }
 0x7bb   :  { %4058 = vmatprep.subr.mxu1 %v4391_v18  ;;  %4071 = vmatprep.mubr.msk.bf16.mxu0 %vm4392_vm4, %v4391_v18 }
 0x7bc   :  { %4059 = vmatpush3.msra.mxu1 %v4703_v40  ;;  %v4200_v40 = vld [vmem:[%s5316_s15 + $0x8] sm:$0xff]   ;;  %4068 = vmatpush3.bf16.msra.mxu0 %v4199_v39 }
 0x7bd   :  { %4060 = vmatprep.subr.mxu1 %v4391_v18  ;;  %4069 = vmatprep.subr.bf16.mxu0 %v4391_v18 }
 0x7be   :  { %4061 = vmatpush3.msra.mxu1 %v4711_v41  ;;  %v4201_v41 = vld [vmem:[%s5315_s14] sm:$0xff]  }
 0x7bf   :  { %4062 = vmatprep.subr.mxu1 %v4391_v18 }
 0x7c0   :  { %4063 = vmatpush3.msra.mxu1 %v4721_v42  ;;  %v4202_v42 = vld [vmem:[%s5316_s15] sm:$0xff]   ;;  %4070 = vmatpush3.bf16.msra.mxu0 %v4201_v41 }
 0x7c1   :  { %4065 = vmatmul.mubr.msk.f32.vlgmr.msra.gmra.mxu1 %vm447_vm5, %v2159_v28  ;;  %4075 = vmatprep.subr.bf16.mxu1 %v4391_v18  ;;  %v5133_v28 = vsub.s32 0, %v2534_v25 }
 0x7c2   :  { %4079 = vmatprep.mubr.msk.bf16.mxu1 %vm4392_vm4, %v4391_v18  ;;  %4076 = vmatpush3.bf16.msra.mxu1 %v4200_v40 }
 0x7c3   :  { %4077 = vmatprep.subr.bf16.mxu1 %v4391_v18  ;;  %4083 = vmatprep.subr.bf16.mxu0 %v4391_v18 }
 0x7c4   :  { %4072 = vmatmul.mubr.msk.bf16.vlgmr.msra.gmra.mxu0 %vm447_vm5, %v2407_v63 }
 0x7c5   :  { %4087 = vmatprep.mubr.msk.bf16.mxu0 %vm4392_vm4, %v4391_v18  ;;  %4084 = vmatpush3.bf16.msra.mxu0 %v4204_v34 }
 0x7c6   :  { %4078 = vmatpush3.bf16.msra.mxu1 %v4202_v42  ;;  %4085 = vmatprep.subr.bf16.mxu0 %v4391_v18 }
 0x7c7   :  { %4091 = vmatprep.subr.bf16.mxu1 %v4391_v18 }
 0x7c9   :  { %4086 = vmatpush3.bf16.msra.mxu0 %v4206_v36 }
 0x7ca   :  { %4099 = vmatprep.subr.bf16.mxu0 %v4207_v12 }
 0x7cc   :  { %4088 = vmatmul.mubr.msk.bf16.vlgmr.msra.gmra.mxu0 %vm447_vm5, %v2407_v63 }
 0x7cd   :  { %4100 = vmatpush3.bf16.msra.mxu0 %v4207_v12 }
 0x7ce   :  { %4101 = vmatprep.subr.bf16.mxu0 %v4208_v15 }
 0x7d1   :  { %4102 = vmatpush3.bf16.msra.mxu0 %v4208_v15 }
 0x7d2   :  { %4103 = vmatprep.subr.bf16.mxu0 %v4209_v17 }
 0x7d5   :  { %4104 = vmatpush3.bf16.msra.mxu0 %v4209_v17 }
 0x7d6   :  { %4105 = vmatprep.subr.bf16.mxu0 %v4210_v20 }
 0x7d9   :  { %4106 = vmatpush3.bf16.msra.mxu0 %v4210_v20 }
 0x7da   :  { %4158 = vmatprep.subr.bf16.mxu0 %v4391_v18 }
 0x879   :  { %v2228_v43 = vpop.f32.mrf.mxu1  ;;  %v2298_v44 = vpop.f32.mrf.mxu0 }
 0x87a   :  { %v2229_v45 = vadd.f32 %v4758_v51, %v2228_v43  ;;  %v2299_v50 = vadd.f32 %v4769_v61, %v2298_v44 }
 0x87b   :  { %v4044_v14 = vpop.f32.mrf.mxu1  ;;  %v4055_v46 = vpop.f32.mrf.mxu0 }
 0x87c   :  { %v2373_v49 = vrot.slane %v2229_v45, 2  ;;  %v2383_v55 = vrot.slane %v2299_v50, 2 }
 0x87e   :  { %v2375_v52 = vadd.f32 %v2373_v49, %v4754_v47  ;;  %v2385_v58 = vadd.f32 %v2383_v55, %v4756_v48 }
 0x880   :  { %v3507_v54 = vmul.f32 -1.442695, %v2375_v52  ;;  %v3508_v59 = vmul.f32 -1.442695, %v2385_v58 }
 0x881   :  { %v2368_v56 = vpop.f32.mrf.mxu1 }
 0x882   :  { %4291 = vpow2.f32 %v3507_v54  ;;  %v2369_v24 = vadd.f32 %v4775_v10, %v2368_v56  ;;  %v4203_v10 = vld [vmem:[%s5318_s17 + $0x8] sm:$0xff]  }
 0x883   :  { %v4066_v57 = vpop.f32.mrf.mxu1  ;;  %4293 = vpow2.f32 %v3508_v59 }
 0x884   :  { %v2393_v29 = vrot.slane %v2369_v24, 2  ;;  %v2461_v38 = vpop.f32.mrf.mxu0 }
 0x886   :  { %v4073_v6 = vpop.f32.mrf.mxu0 }
 0x888   :  { %v2464_v7 = vpop.f32.mrf.mxu0 }
 0x88a   :  { %v4074_v8 = vpop.f32.mrf.mxu0 }
 0x88b   :  { %v5164_v8 = vld [vmem:[%s5319_s18] ss:$0 sm:$0xff] }
 0x88c   :  { %v5113_v9 = vpop.f32.mrf.mxu0 }
 0x88e   :  { %v4089_v11 = vpop.f32.mrf.mxu0 }
 0x88f   :  { %v4292_v62 = vpop.eup %4291 }
 0x890   :  { %v2379_v0 = vadd.f32 1.0, %v4292_v62  ;;  %v4294_v51 = vpop.eup %4293  ;;  %v5118_v13 = vpop.f32.mrf.mxu0 }
 0x891   :  { %v2389_v27 = vadd.f32 1.0, %v4294_v51 }
 0x892   :  { %4295 = vrcp.f32 %v2379_v0  ;;  %v4090_v16 = vpop.f32.mrf.mxu0 }
 0x893   :  { %4297 = vrcp.f32 %v2389_v27 }
 0x89f   :  { %v4296_v61 = vpop.eup %4295 }
 0x8a0   :  { %v2395_v47 = vmul.f32 %v4296_v61, %v2393_v29  ;;  %v4298_v33 = vpop.eup %4297 }
 0x8a1   :  { %v2398_v48 = vsub.f32 1.0, %v4298_v33  ;;  %v2402_v3 = vmul.f32 %v4298_v33, %v2400_v35 }
 0x8a2   :  { %v2396_v31 = vadd.f32 %v2395_v47, %v4767_v60  ;;  %v4205_v60 = vld [vmem:[%s5318_s17] sm:$0xff]  }
 0x8a4   :  { %4299 = vtanh.f32 %v2396_v31 }
 0x8b1   :  { %v4300_v1 = vpop.eup %4299 }
 0x8b2   :  { %v2399_v2 = vmul.f32 %v4300_v1, %v2398_v48 }
 0x8b4   :  { %v2403_v4 = vadd.f32 %v2402_v3, %v2399_v2 }
 0x8b6   :  { %v2404_v37 = vpack.c.bf16 %v2403_v4, %v2403_v4 }
 0x8b8   :  { %v2473_v5 = vrot.slane %v2404_v37, 3 }
 0x8ba   :  { %4080 = vmatmul.mubr.msk.bf16.vlgmr.msra.gmra.mxu1 %vm447_vm5, %v2473_v5 }
 0x8bb   :  { %4092 = vmatpush3.bf16.msra.mxu1 %v4203_v10  ;;  %4095 = vmatprep.mubr.msk.bf16.mxu1 %vm4392_vm4, %v4391_v18 }
 0x8bc   :  { %4093 = vmatprep.subr.bf16.mxu1 %v4391_v18 }
 0x8bf   :  { %4094 = vmatpush3.bf16.msra.mxu1 %v4205_v60 }
 0x8c0   :  { %4123 = vmatprep.subr.mxu1 %v4391_v18 }
 0x8c2   :  { %4096 = vmatmul.mubr.msk.bf16.vlgmr.msra.gmra.mxu1 %vm447_vm5, %v2473_v5 }
 0x8c3   :  { %4155 = vmatprep.mubr.msk.f32.mxu1 %vm4392_vm4, %v4391_v18 }
 0x97a   :  { %v2523_v53 = vpop.f32.mrf.mxu1 }
 0x97b   :  { %v2536_v39 = vrot.slane %v2523_v53, %v5131_v26 }
 0x97c   :  { %v4081_v40 = vpop.f32.mrf.mxu1 }
 0x97d   :  { %v2537_v41 = vcombine.high %v2536_v39, %v2536_v39  ;;  %v2544_v42 = vrot.slane %v2536_v39, %v5131_v26 }
 0x97e   :  { %v2526_v30 = vpop.f32.mrf.mxu1 }
 0x97f   :  { %v2555_v32 = vrot.slane %v2544_v42, %v5133_v28  ;;  %v2551_v63 = vrot.slane %v2537_v41, %v5131_v26 }
 0x980   :  { %v4082_v34 = vpop.f32.mrf.mxu1 }
 0x981   :  { %v2562_v36 = vadd.f32 %v2555_v32, %v2461_v38  ;;  %v2559_v19 = vrot.slane %v2551_v63, %v5133_v28 }
 0x982   :  { %v2671_v43 = vpop.f32.mrf.mxu1 }
 0x983   :  { %v2714_v44 = vcombine.high %v2562_v36, %v2562_v36  ;;  %v2721_v45 = vrot.slane %v2562_v36, %v5131_v26  ;;  %v2563_v14 = vadd.f32 %v2559_v19, %v2464_v7  ;;  %v2684_v46 = vrot.slane %v2671_v43, %v5131_v26 }
 0x984   :  { %v4097_v49 = vpop.f32.mrf.mxu1 }
 0x985   :  { %v2728_v50 = vrot.slane %v2714_v44, %v5131_v26  ;;  %v2729_v52 = vcombine.high %v2721_v45, %v2721_v45  ;;  %v2737_v54 = vrot.slane %v2721_v45, %v5131_v26  ;;  %v2763_v55 = vcombine.high %v2563_v14, %v2563_v14 }
 0x986   :  { %v2770_v56 = vrot.slane %v2563_v14, %v5131_v26  ;;  %v2674_v57 = vpop.f32.mrf.mxu1  ;;  %v2685_v62 = vcombine.high %v2684_v46, %v2684_v46  ;;  %v2692_v0 = vrot.slane %v2684_v46, %v5131_v26 }
 0x987   :  { %v2751_v58 = vrot.slane %v2729_v52, %v5131_v26  ;;  %v2759_v59 = vcombine.high %v2737_v54, %v2737_v54  ;;  %v2730_v51 = vcombine.high %v2728_v50, %v2728_v50  ;;  %v2777_v24 = vrot.slane %v2763_v55, %v5131_v26 }
 0x988   :  { %v2778_v27 = vcombine.high %v2770_v56, %v2770_v56  ;;  %v4098_v29 = vpop.f32.mrf.mxu1  ;;  %v2744_v47 = vrot.slane %v2728_v50, %v5131_v26  ;;  %v2786_v33 = vrot.slane %v2770_v56, %v5131_v26  ;;  %v2703_v1 = vrot.slane %v2692_v0, %v5133_v28 }
 0x989   :  { %v2761_v61 = vcombine.high %v2751_v58, %v2751_v58  ;;  %v2779_v31 = vcombine.high %v2777_v24, %v2777_v24  ;;  %v2823_v35 = vrot.slane %v2759_v59, %v5133_v28  ;;  %v2699_v2 = vrot.slane %v2685_v62, %v5131_v26 }
 0x98a   :  { %v2800_v48 = vrot.slane %v2778_v27, %v5131_v26  ;;  %v2758_v3 = vrot.slane %v2730_v51, %v5131_v26  ;;  %v2815_v37 = vrot.slane %v2737_v54, %v5133_v28  ;;  %v2710_v10 = vadd.f32 %v2703_v1, %v5113_v9 }
 0x98b   :  { %v2827_v4 = vrot.slane %v2761_v61, %v5133_v28  ;;  %v2707_v5 = vrot.slane %v2699_v2, %v5133_v28  ;;  %v2760_v60 = vcombine.high %v2744_v47, %v2744_v47  ;;  %v2807_v38 = vrot.slane %v2779_v31, %v5131_v26 }
 0x98c   :  { %v2808_v6 = vcombine.high %v2786_v33, %v2786_v33  ;;  %v2847_v7 = vrot.slane %v2786_v33, %v5133_v28  ;;  %v2851_v11 = vrot.slane %v2800_v48, %v5133_v28  ;;  %v2819_v12 = vrot.slane %v2751_v58, %v5133_v28 }
 0x98d   :  { %v2892_v15 = vadd.f32 %v2815_v37, %v2710_v10  ;;  %v2894_v9 = vadd.f32 %v2823_v35, %v2710_v10  ;;  %v5169_v16 = vadd.f32 %v2707_v5, %v5118_v13  ;;  %v2895_v17 = vadd.f32 %v2827_v4, %v2710_v10 }
 0x98e   :  { %v2831_v20 = vrot.slane %v2744_v47, %v5133_v28  ;;  %v2835_v21 = vrot.slane %v2758_v3, %v5133_v28  ;;  %v2893_v22 = vadd.f32 %v2819_v12, %v2710_v10  ;;  %v2762_v53 = vcombine.high %v2758_v3, %v2758_v3 }
 0x98f   :  { %v2915_v23 = vadd.f32 %v5164_v8, %v2892_v15  ;;  %v2917_v25 = vadd.f32 %v5164_v8, %v2894_v9  ;;  %v2918_v39 = vadd.f32 %v5164_v8, %v2895_v17  ;;  %v2839_v42 = vrot.slane %v2760_v60, %v5133_v28 }
 0x990   :  { %v2896_v40 = vadd.f32 %v2831_v20, %v2710_v10  ;;  %v2897_v41 = vadd.f32 %v2835_v21, %v2710_v10  ;;  %v2810_v30 = vcombine.high %v2800_v48, %v2800_v48  ;;  %v2916_v13 = vadd.f32 %v5164_v8, %v2893_v22 }
 0x991   :  { %v2931_v32 = vmax.f32 %v2915_v23, 0.0  ;;  %v2843_v63 = vrot.slane %v2762_v53, %v5133_v28  ;;  %v2933_v34 = vmax.f32 %v2917_v25, 0.0  ;;  %v2934_v36 = vmax.f32 %v2918_v39, 0.0 }
 0x992   :  { %v2919_v19 = vadd.f32 %v5164_v8, %v2896_v40  ;;  %v2920_v43 = vadd.f32 %v5164_v8, %v2897_v41  ;;  %v2932_v44 = vmax.f32 %v2916_v13, 0.0  ;;  %v2900_v14 = vadd.f32 %v2847_v7, %v5169_v16  ;;  %v4212_v40 = vld [vmem:[%s5322_s21 + $0x10] sm:$0xff]   ;;  %v4214_v41 = vld [vmem:[%s5322_s21] sm:$0xff]  }
 0x993   :  { %v2899_v45 = vadd.f32 %v2843_v63, %v2710_v10  ;;  %v2901_v46 = vadd.f32 %v2851_v11, %v5169_v16  ;;  %v2948_v49 = vpack.c.bf16 %v2934_v36, %v2933_v34  ;;  %v2898_v54 = vadd.f32 %v2839_v42, %v2710_v10 }
 0x994   :  { %v2935_v50 = vmax.f32 %v2919_v19, 0.0  ;;  %v2936_v52 = vmax.f32 %v2920_v43, 0.0  ;;  %v2793_v55 = vrot.slane %v2777_v24, %v5131_v26  ;;  %v2947_v56 = vpack.c.bf16 %v2932_v44, %v2931_v32 }
 0x995   :  { %v2859_v57 = vrot.slane %v2810_v30, %v5133_v28  ;;  %v2922_v59 = vadd.f32 %v5164_v8, %v2899_v45  ;;  %v2867_v62 = vrot.slane %v2807_v38, %v5133_v28  ;;  %v2923_v0 = vadd.f32 %v5164_v8, %v2900_v14 }
 0x996   :  { %v2949_v58 = vpack.c.bf16 %v2936_v52, %v2935_v50  ;;  %4107 = vmatprep.mubr.msk.bf16.mxu0 %vm2994_vm6, %v2947_v56  ;;  %v2924_v51 = vadd.f32 %v5164_v8, %v2901_v46  ;;  %v2855_v27 = vrot.slane %v2808_v6, %v5133_v28  ;;  %v2921_v26 = vadd.f32 %v5164_v8, %v2898_v54  ;;  %v3522_v50 = vld [vmem:[%s5321_s20] ss:$0 sm:$0xff] }
 0x997   :  { %4108 = vmatmul.mubr.msk.bf16.vlgmr.msra.gmra.mxu0 %vm2994_vm6, %v2948_v49  ;;  %v2863_v24 = vrot.slane %v2793_v55, %v5133_v28  ;;  %v2811_v29 = vcombine.high %v2807_v38, %v2807_v38  ;;  %v2938_v61 = vmax.f32 %v2922_v59, 0.0  ;;  %v2903_v47 = vadd.f32 %v2859_v57, %v5169_v16 }
 0x998   :  { %4111 = vmatprep.mubr.msk.bf16.mxu0 %vm2994_vm6, %v2949_v58  ;;  %v2939_v31 = vmax.f32 %v2923_v0, 0.0  ;;  %v2940_v33 = vmax.f32 %v2924_v51, 0.0  ;;  %v2905_v35 = vadd.f32 %v2867_v62, %v5169_v16  ;;  %v2809_v48 = vcombine.high %v2793_v55, %v2793_v55 }
 0x999   :  { %v2937_v1 = vmax.f32 %v2921_v26, 0.0  ;;  %v2902_v2 = vadd.f32 %v2855_v27, %v5169_v16  ;;  %v2904_v3 = vadd.f32 %v2863_v24, %v5169_v16  ;;  %v2875_v4 = vrot.slane %v2811_v29, %v5133_v28 }
 0x99a   :  { %v2926_v10 = vadd.f32 %v5164_v8, %v2903_v47  ;;  %v2951_v5 = vpack.c.bf16 %v2940_v33, %v2939_v31  ;;  %v2928_v60 = vadd.f32 %v5164_v8, %v2905_v35  ;;  %v2871_v38 = vrot.slane %v2809_v48, %v5133_v28 }
 0x99b   :  { %v2950_v37 = vpack.c.bf16 %v2938_v61, %v2937_v1  ;;  %v2925_v6 = vadd.f32 %v5164_v8, %v2902_v2  ;;  %v2927_v7 = vadd.f32 %v5164_v8, %v2904_v3  ;;  %v2907_v12 = vadd.f32 %v2875_v4, %v5169_v16 }
 0x99c   :  { %v2942_v11 = vmax.f32 %v2926_v10, 0.0  ;;  %v2944_v15 = vmax.f32 %v2928_v60, 0.0  ;;  %v2906_v17 = vadd.f32 %v2871_v38, %v5169_v16  ;;  %v4211_v16 = vld [vmem:[%s5322_s21 + $0x18] sm:$0xff]  }
 0x99d   :  { %v2941_v9 = vmax.f32 %v2925_v6, 0.0  ;;  %v2943_v20 = vmax.f32 %v2927_v7, 0.0  ;;  %v2930_v22 = vadd.f32 %v5164_v8, %v2907_v12  ;;  %4159 = vmatpush3.bf16.msra.mxu0 %v4211_v16 }
 0x99e   :  { %v2929_v23 = vadd.f32 %v5164_v8, %v2906_v17  ;;  %4160 = vmatprep.subr.bf16.mxu0 %v4391_v18  ;;  %v4213_v8 = vld [vmem:[%s5322_s21 + $0x8] sm:$0xff]   ;;  %v4215_v17 = vld [vmem:[%s5324_s23 + $0x18] sm:$0xff]  }
 0x99f   :  { %4112 = vmatmul.mubr.msk.bf16.gmra.mxu0 %vm2994_vm6, %v2950_v37  ;;  %v2952_v21 = vpack.c.bf16 %v2942_v11, %v2941_v9  ;;  %v2953_v28 = vpack.c.bf16 %v2944_v15, %v2943_v20  ;;  %v2946_v25 = vmax.f32 %v2930_v22, 0.0  ;;  %v3132_v9 = vld [vmem:[%s5328_s27] sm:$0x3]  ;;  %v4216_v20 = vld [vmem:[%s5324_s23 + $0x10] sm:$0xff]  }
 0x9a0   :  { %4115 = vmatprep.mubr.msk.bf16.mxu0 %vm2994_vm6, %v2951_v5  ;;  %v2945_v53 = vmax.f32 %v2929_v23, 0.0  ;;  %v4217_v23 = vld [vmem:[%s5324_s23 + $0x8] sm:$0xff]  }
 0x9a1   :  { %4161 = vmatpush3.bf16.msra.mxu0 %v4212_v40 }
 0x9a2   :  { %v2954_v39 = vpack.c.bf16 %v2946_v25, %v2945_v53  ;;  %4162 = vmatprep.subr.bf16.mxu0 %v4391_v18  ;;  %v4218_v25 = vld [vmem:[%s5324_s23] sm:$0xff]   ;;  %v4219_v53 = vld [vmem:[%s5326_s25 + $0x8] sm:$0xff]  }
 0x9a5   :  { %4163 = vmatpush3.bf16.msra.mxu0 %v4213_v8 }
 0x9a6   :  { %4164 = vmatprep.subr.bf16.mxu0 %v4391_v18 }
 0x9a7   :  { %4116 = vmatmul.mubr.msk.bf16.gmra.mxu0 %vm2994_vm6, %v2952_v21 }
 0x9a8   :  { %4119 = vmatprep.mubr.msk.bf16.mxu0 %vm2994_vm6, %v2953_v28 }
 0x9a9   :  { %4165 = vmatpush3.bf16.msra.mxu0 %v4214_v41 }
 0x9aa   :  { %4182 = vmatprep.subr.bf16.mxu0 %v4391_v18 }
 0x9af   :  { %4120 = vmatmul.mubr.msk.bf16.gmra.mxu0 %vm2994_vm6, %v2954_v39  ;;  %v3535_v39 = vld [vmem:[%s5323_s22] ss:$0 sm:$0xff] }
 0x9b0   :  { %4166 = vmatprep.mubr.msk.bf16.mxu0 %vm4392_vm4, %v4391_v18 }
 0xa57   :  { %v4109_v42 = vpop.f32.mrf.mxu0 }
 0xa58   :  { %v3062_v5 = vadd.f32 %v4109_v42, %v3522_v50 }
 0xa59   :  { %v5232_v30 = vpop.f32.mrf.mxu0 }
 0xa5a   :  { %v3118_v7 = vmax.f32 %v3062_v5, 0.0  ;;  %v3054_v11 = vadd.f32 %v3522_v50, %v5232_v30 }
 0xa5b   :  { %v4110_v13 = vpop.f32.mrf.mxu0 }
 0xa5c   :  { %v3065_v37 = vadd.f32 %v4110_v13, %v3522_v50  ;;  %v3116_v15 = vmax.f32 %v3054_v11, 0.0 }
 0xa5d   :  { %v5234_v32 = vpop.f32.mrf.mxu0 }
 0xa5e   :  { %v3119_v38 = vmax.f32 %v3065_v37, 0.0  ;;  %v3057_v6 = vadd.f32 %v3522_v50, %v5234_v32  ;;  %v4220_v32 = vld [vmem:[%s5326_s25] sm:$0xff]   ;;  %s3445_s25 = sshll.u32 %s4394_s7, 4  ;;  %s3446_s25 = int_to_ptr.vmem [resolvable:$true] %s3445_s25 }
 0xa5f   :  { %v4113_v63 = vpop.f32.mrf.mxu0  ;;  %p4366_p2 = scmp.lt.s32.totalorder %s3446_s25, %s3446_s25 }
 0xa60   :  { %v3078_v35 = vadd.f32 %v4113_v63, %v3522_v50  ;;  %v3117_v12 = vmax.f32 %v3057_v6, 0.0 }
 0xa61   :  { %v3069_v34 = vpop.f32.mrf.mxu0 }
 0xa62   :  { %v3122_v3 = vmax.f32 %v3078_v35, 0.0  ;;  %v3070_v4 = vadd.f32 %v3522_v50, %v3069_v34 }
 0xa63   :  { %v4114_v36 = vpop.f32.mrf.mxu0 }
 0xa64   :  { %v3081_v31 = vadd.f32 %v4114_v36, %v3522_v50  ;;  %v3120_v60 = vmax.f32 %v3070_v4, 0.0 }
 0xa65   :  { %v3072_v19 = vpop.f32.mrf.mxu0 }
 0xa66   :  { %v3123_v1 = vmax.f32 %v3081_v31, 0.0  ;;  %v3073_v2 = vadd.f32 %v3522_v50, %v3072_v19 }
 0xa67   :  { %v4117_v43 = vpop.f32.mrf.mxu0 }
 0xa68   :  { %v3094_v27 = vadd.f32 %v4117_v43, %v3522_v50  ;;  %v3121_v10 = vmax.f32 %v3073_v2, 0.0 }
 0xa69   :  { %v3085_v44 = vpop.f32.mrf.mxu0 }
 0xa6a   :  { %v3126_v61 = vmax.f32 %v3094_v27, 0.0  ;;  %v3086_v47 = vadd.f32 %v3522_v50, %v3085_v44 }
 0xa6b   :  { %v4118_v45 = vpop.f32.mrf.mxu0 }
 0xa6c   :  { %v3097_v0 = vadd.f32 %v4118_v45, %v3522_v50  ;;  %v3124_v48 = vmax.f32 %v3086_v47, 0.0 }
 0xa6d   :  { %v3088_v14 = vpop.f32.mrf.mxu0 }
 0xa6e   :  { %v3127_v24 = vmax.f32 %v3097_v0, 0.0  ;;  %v3089_v29 = vadd.f32 %v3522_v50, %v3088_v14  ;;  %v3547_v14 = vld [vmem:[%s5327_s26] ss:$0 sm:$0xff] }
 0xa6f   :  { %v4121_v46 = vpop.f32.mrf.mxu0 }
 0xa70   :  { %v3110_v54 = vadd.f32 %v4121_v46, %v3522_v50  ;;  %v3125_v33 = vmax.f32 %v3089_v29, 0.0 }
 0xa71   :  { %v3101_v49 = vpop.f32.mrf.mxu0 }
 0xa72   :  { %v3130_v59 = vmax.f32 %v3110_v54, 0.0  ;;  %v3102_v62 = vadd.f32 %v3522_v50, %v3101_v49 }
 0xa73   :  { %v4122_v52 = vpop.f32.mrf.mxu0 }
 0xa74   :  { %v3113_v55 = vadd.f32 %v4122_v52, %v3522_v50  ;;  %v3128_v26 = vmax.f32 %v3102_v62, 0.0 }
 0xa75   :  { %v3104_v56 = vpop.f32.mrf.mxu0 }
 0xa76   :  { %v3131_v57 = vmax.f32 %v3113_v55, 0.0  ;;  %v3105_v58 = vadd.f32 %v3522_v50, %v3104_v56 }
 0xa78   :  { %4124 = vmatpush3.msra.mxu1 %v3131_v57  ;;  %v3129_v51 = vmax.f32 %v3105_v58, 0.0 }
 0xa79   :  { %4125 = vmatprep.subr.mxu1 %v4391_v18 }
 0xa7a   :  { %4126 = vmatpush3.msra.mxu1 %v3130_v59 }
 0xa7b   :  { %4127 = vmatprep.subr.mxu1 %v4391_v18 }
 0xa7c   :  { %4128 = vmatpush3.msra.mxu1 %v3129_v51 }
 0xa7d   :  { %4129 = vmatprep.subr.mxu1 %v4391_v18 }
 0xa7e   :  { %4130 = vmatpush3.msra.mxu1 %v3128_v26 }
 0xa7f   :  { %4131 = vmatprep.subr.mxu1 %v4391_v18 }
 0xa80   :  { %4132 = vmatpush3.msra.mxu1 %v3127_v24 }
 0xa81   :  { %4133 = vmatprep.subr.mxu1 %v4391_v18 }
 0xa82   :  { %4134 = vmatpush3.msra.mxu1 %v3126_v61 }
 0xa83   :  { %4135 = vmatprep.subr.mxu1 %v4391_v18 }
 0xa84   :  { %4136 = vmatpush3.msra.mxu1 %v3125_v33 }
 0xa85   :  { %4137 = vmatprep.subr.mxu1 %v4391_v18 }
 0xa86   :  { %4138 = vmatpush3.msra.mxu1 %v3124_v48 }
 0xa87   :  { %4139 = vmatprep.subr.mxu1 %v4391_v18 }
 0xa88   :  { %4140 = vmatpush3.msra.mxu1 %v3123_v1 }
 0xa89   :  { %4141 = vmatprep.subr.mxu1 %v4391_v18 }
 0xa8a   :  { %4142 = vmatpush3.msra.mxu1 %v3122_v3 }
 0xa8b   :  { %4143 = vmatprep.subr.mxu1 %v4391_v18 }
 0xa8c   :  { %4144 = vmatpush3.msra.mxu1 %v3121_v10 }
 0xa8d   :  { %4145 = vmatprep.subr.mxu1 %v4391_v18 }
 0xa8e   :  { %4146 = vmatpush3.msra.mxu1 %v3120_v60 }
 0xa8f   :  { %4147 = vmatprep.subr.mxu1 %v4391_v18 }
 0xa90   :  { %4148 = vmatpush3.msra.mxu1 %v3119_v38 }
 0xa91   :  { %4149 = vmatprep.subr.mxu1 %v4391_v18 }
 0xa92   :  { %4150 = vmatpush3.msra.mxu1 %v3118_v7 }
 0xa93   :  { %4151 = vmatprep.subr.mxu1 %v4391_v18 }
 0xa94   :  { %4152 = vmatpush3.msra.mxu1 %v3117_v12 }
 0xa95   :  { %4153 = vmatprep.subr.mxu1 %v4391_v18 }
 0xa96   :  { %4154 = vmatpush3.msra.mxu1 %v3116_v15 }
 0xa97   :  { %4156 = vmatmul.mubr.f32.vlgmr.msra.gmra.mxu1 %v3132_v9  ;;  %4170 = vmatprep.subr.bf16.mxu1 %v4391_v18 }
 0xa98   :  { %4178 = vmatprep.mubr.msk.bf16.mxu1 %vm4392_vm4, %v4391_v18  ;;  %4171 = vmatpush3.bf16.msra.mxu1 %v4215_v17 }
 0xa99   :  { %4172 = vmatprep.subr.bf16.mxu1 %v4391_v18 }
 0xa9c   :  { %4173 = vmatpush3.bf16.msra.mxu1 %v4216_v20 }
 0xa9d   :  { %4174 = vmatprep.subr.bf16.mxu1 %v4391_v18 }
 0xaa0   :  { %4175 = vmatpush3.bf16.msra.mxu1 %v4217_v23 }
 0xaa1   :  { %4176 = vmatprep.subr.bf16.mxu1 %v4391_v18 }
 0xaa4   :  { %4177 = vmatpush3.bf16.msra.mxu1 %v4218_v25 }
 0xb57   :  { %v3199_v21 = vpop.f32.mrf.mxu1 }
 0xb58   :  { %v3203_v22 = vpack.c.bf16 %v3199_v21, %v3199_v21 }
 0xb59   :  { %v4157_v28 = vpop.f32.mrf.mxu1 }
 0xb5a   :  { %4167 = vmatmul.mubr.msk.bf16.vlgmr.msra.gmra.mxu0 %vm2994_vm6, %v3203_v22 }
 0xb5b   :  { %4186 = vmatprep.mubr.msk.bf16.mxu0 %vm4392_vm4, %v4391_v18  ;;  %4183 = vmatpush3.bf16.msra.mxu0 %v4219_v53 }
 0xb5c   :  { %4184 = vmatprep.subr.bf16.mxu0 %v4391_v18  ;;  %v3541_v18 = vld [vmem:[%s5325_s24] ss:$0 sm:$0xff]  ;;  %s4361_s24 = scalar_lea.vmem %s3446_s25, 32 }
 0xb5d   :  { %p4362_p1 = scmp.ne.s32.totalorder %s3446_s25, %s4361_s24  ;;  %p4367_p3 = scmp.lt.s32.totalorder %s4361_s24, %s4361_s24 }
 0xb5f   :  { %4185 = vmatpush3.bf16.msra.mxu0 %v4220_v32  ;;  %p4368_p4 = por %p4367_p3, %p4366_p2 }
 0xb61   :  { %p4369_p5 = pnand %p4368_p4, %p4362_p1 }
 0xc1a   :  { %v3280_v16 = vpop.f32.mrf.mxu0 }
 0xc1b   :  { %v3281_v40 = vadd.f32 %v3535_v39, %v3280_v16 }
 0xc1c   :  { %v4168_v8 = vpop.f32.mrf.mxu0 }
 0xc1d   :  { %v3286_v41 = vmax.f32 %v3281_v40, 0.0 }
 0xc1e   :  { %v3283_v42 = vpop.f32.mrf.mxu0 }
 0xc1f   :  { %v3287_v30 = vpack.c.bf16 %v3286_v41, %v3286_v41 }
 0xc20   :  { %v4169_v13 = vpop.f32.mrf.mxu0 }
 0xc21   :  { %4179 = vmatmul.mubr.msk.bf16.vlgmr.msra.gmra.mxu1 %vm2994_vm6, %v3287_v30 }
 0xce1   :  { %v3364_v63 = vpop.f32.mrf.mxu1 }
 0xce2   :  { %v3365_v34 = vadd.f32 %v3541_v18, %v3364_v63 }
 0xce3   :  { %v4180_v36 = vpop.f32.mrf.mxu1 }
 0xce4   :  { %v3370_v19 = vmax.f32 %v3365_v34, 0.0 }
 0xce5   :  { %v3367_v43 = vpop.f32.mrf.mxu1 }
 0xce6   :  { %v3371_v44 = vpack.c.bf16 %v3370_v19, %v3370_v19 }
 0xce7   :  { %v4181_v45 = vpop.f32.mrf.mxu1 }
 0xce8   :  { %4187 = vmatmul.mubr.msk.bf16.vlgmr.msra.gmra.mxu0 %vm447_vm5, %v3371_v44 }
 0xda8   :  { %v3432_v46 = vpop.f32.mrf.mxu0 }
 0xda9   :  { %v3433_v49 = vadd.f32 %v3547_v14, %v3432_v46 }
 0xdaa   :  { %v4188_v50 = vpop.f32.mrf.mxu0 }
 0xdab   :  { %3438 = vst [vmem:[#allocation8] sm:$0x3] %v3433_v49 }
 0xdac   :  { %v3435_v52 = vpop.f32.mrf.mxu0 }
 0xdad   :  { %4372 = shalt.err (!%p4369_p5)
}
 0xdae   :  { %3448 = dma.vmem_to_hbm [thread:$0]  %s3446_s25, 32, %s5329_s28, [#allocation4]   ;;  %v4189_v54 = vpop.f32.mrf.mxu0 }
 0xdaf   :  { %4385 = dma.done.wait [#allocation4], 32  }
 0xdb0   :  { %4386 = vsyncadd [#allocation4], 4294967264 }
 0xdb1   :  { %3452 = vsyncpa [#allocation3], 1 }
 0xdb2   :  { %3453 = vsyncpa [#allocation6], 1 }
 0xdb3   :  { %3454 = vsyncpa [#allocation4], 1 }

</bundles_post_ra>
